<compile_context>
chip_gen: v7x
topology: tpu7x:2x2x1
jax: 0.10.0
libtpu: 0.0.40
codegen_flags: <defaults>
</compile_context>

<pallas_src>
import math

import jax
import jax.numpy as jnp
from jax.experimental import pallas as pl
from jax.experimental.pallas import tpu as pltpu

# ----------------------------- config (small, consistent with module) --------
BATCH = 2
SEQ = 8
HIDDEN = 32
N_HEAD = 4
HEAD_DIM = HIDDEN // N_HEAD
INNER = 4 * HIDDEN            # config.n_inner default = 4 * hidden_size
EPS = 1e-5                    # config.layer_norm_epsilon
M_RESIDUAL = None             # config.m_residual default is None (no scaling)
NEG_BIG = -1e30

BS = BATCH * SEQ              # flattened (batch, seq) rows
PACK_W = 128                  # lane width used for every padded tensor

# rows of the packed [8, 128] f32 parameter block (one DMA for all small vectors)
(ROW_LN1_W, ROW_LN1_B, ROW_B_O, ROW_LN2_W,
 ROW_LN2_B, ROW_B_PROJ, ROW_B_FC, ROW_B_QKV) = range(8)


def _layernorm_padded(h, w, b):
    """LayerNorm over the first HIDDEN lanes of a [rows, 128] tensor whose lanes >= HIDDEN
    are exactly zero, so sums over 128 lanes equal sums over HIDDEN lanes.  w/b are zero in
    the padded lanes so the output padding stays exactly zero."""
    s1 = jnp.sum(h, axis=-1, keepdims=True)
    s2 = jnp.sum(h * h, axis=-1, keepdims=True)
    mu = s1 * (1.0 / HIDDEN)
    var = s2 * (1.0 / HIDDEN) - mu * mu
    return (h - mu) * jax.lax.rsqrt(var + EPS) * w + b


def _block_kernel(x_ref, p_ref, wqkv_ref, wo_ref, wfc_ref, wpr_ref, out_ref):
    x = x_ref[...].astype(jnp.float32)           # [SEQ, 128]  (lanes >= HIDDEN are zero)
    pv = p_ref[...]                              # [8, 128] f32 packed small params

    def prow(row):
        return pv[row:row + 1, :]                # [1, 128] (broadcasts over rows)

    ln1_w, ln1_b = prow(ROW_LN1_W), prow(ROW_LN1_B)
    ln2_w, ln2_b = prow(ROW_LN2_W), prow(ROW_LN2_B)
    b_o, b_prj = prow(ROW_B_O), prow(ROW_B_PROJ)
    b_fc, b_qkv = prow(ROW_B_FC), prow(ROW_B_QKV)

    # ---- ln_1 + causal self-attention --------------------------------------
    h = _layernorm_padded(x, ln1_w, ln1_b)                                   # [SEQ, 128] f32
    qkv = jnp.dot(h.astype(jnp.bfloat16), wqkv_ref[...],
                  preferred_element_type=jnp.float32) + b_qkv                # [SEQ, 128] f32

    def split_heads(lane_offset):
        # single reshape + transpose per tensor (no per-head lane slices / concats)
        t = qkv[:, lane_offset:lane_offset + HIDDEN].astype(jnp.bfloat16)    # [SEQ, HIDDEN]
        return jnp.transpose(t.reshape(SEQ, N_HEAD, HEAD_DIM), (1, 0, 2))    # [NH, SEQ, HD]

    qh = split_heads(0)
    kh = split_heads(HIDDEN)
    vh = split_heads(2 * HIDDEN)

    # hoisted additive causal bias (one add per head tile instead of a broadcast select)
    rows = jax.lax.broadcasted_iota(jnp.int32, (SEQ, SEQ), 0)
    cols = jax.lax.broadcasted_iota(jnp.int32, (SEQ, SEQ), 1)
    causal_bias = jnp.where(cols <= rows, 0.0, NEG_BIG).astype(jnp.float32)  # [SEQ, SEQ]

    scale = 1.0 / math.sqrt(HEAD_DIM)                                        # scale_attn_weights
    scores = jnp.einsum("hqd,hkd->hqk", qh, kh,
                        preferred_element_type=jnp.float32) * scale          # [NH, SEQ, SEQ]
    scores = scores + causal_bias[None]                                      # f32 mask add

    m = jnp.max(scores, axis=-1, keepdims=True)
    e = jnp.exp(scores - m)                                                  # f32 EUP
    probs = e / jnp.sum(e, axis=-1, keepdims=True)                           # exact reciprocal
    ctx = jnp.einsum("hqk,hkd->hqd", probs.astype(jnp.bfloat16), vh,
                     preferred_element_type=jnp.float32)                     # [NH, SEQ, HD]

    attn = jnp.transpose(ctx, (1, 0, 2)).reshape(SEQ, HIDDEN)                # merge heads
    attn = jnp.dot(attn.astype(jnp.bfloat16), wo_ref[...],
                   preferred_element_type=jnp.float32) + b_o                 # [SEQ, 128] f32

    if M_RESIDUAL is not None:
        attn = attn * M_RESIDUAL
    h1 = attn + x                                                            # first residual

    # ---- ln_2 + MLP ---------------------------------------------------------
    g = _layernorm_padded(h1, ln2_w, ln2_b)
    g = jnp.dot(g.astype(jnp.bfloat16), wfc_ref[...],
                preferred_element_type=jnp.float32) + b_fc                   # [SEQ, INNER] f32
    g = jax.nn.gelu(g, approximate=True)                                     # gelu_pytorch_tanh
    g = jnp.dot(g.astype(jnp.bfloat16), wpr_ref[...],
                preferred_element_type=jnp.float32) + b_prj                  # [SEQ, 128] f32

    if M_RESIDUAL is not None:
        g = g * M_RESIDUAL

    out_ref[...] = (g + h1).astype(out_ref.dtype)                            # second residual


# ----------------------------- wrapper -----------------------------------------
def _pack_small_params(p):
    """Pack the 8 small LN/bias vectors into one [8, 128] f32 block (a single DMA)."""
    def row(v):
        v = jnp.asarray(v, jnp.float32).reshape(-1)
        assert v.shape[0] <= PACK_W, (
            f"packed parameter of length {v.shape[0]} does not fit in {PACK_W} lanes")
        return jnp.pad(v, (0, PACK_W - v.shape[0]))

    rows = [None] * 8
    rows[ROW_LN1_W] = row(p["ln1_w"])
    rows[ROW_LN1_B] = row(p["ln1_b"])
    rows[ROW_B_O] = row(p["b_o"])
    rows[ROW_LN2_W] = row(p["ln2_w"])
    rows[ROW_LN2_B] = row(p["ln2_b"])
    rows[ROW_B_PROJ] = row(p["b_proj"])
    rows[ROW_B_FC] = row(p["b_fc"])
    rows[ROW_B_QKV] = row(p["b_qkv"])
    return jnp.stack(rows, axis=0)                # [8, 128]


def _pad2d(a, rows, cols, dtype):
    a = jnp.asarray(a, jnp.float32)
    return jnp.pad(a, ((0, rows - a.shape[0]), (0, cols - a.shape[1]))).astype(dtype)


def gpt_dolomite_block(x, params):
    """x: [B, S, H] float32.  params: dict of weights (see init_params)."""
    B, S, H = x.shape
    assert (B, S, H) == (BATCH, SEQ, HIDDEN)

    # lane-dense activations: flatten (B, S) and zero-pad hidden to 128 lanes
    x2 = jnp.pad(x.reshape(B * S, H).astype(jnp.float32), ((0, 0), (0, PACK_W - H)))
    packed = _pack_small_params(params)

    # bf16 MXU operands (f32 accumulation in-kernel); zero-padded to lane-dense shapes
    w_qkv = _pad2d(params["w_qkv"], PACK_W, PACK_W, jnp.bfloat16)    # [128, 128]
    w_o = _pad2d(params["w_o"], HIDDEN, PACK_W, jnp.bfloat16)        # [32, 128]
    w_fc = _pad2d(params["w_fc"], PACK_W, INNER, jnp.bfloat16)       # [128, 128]
    w_proj = _pad2d(params["w_proj"], INNER, PACK_W, jnp.bfloat16)   # [128, 128]

    flops = 2 * BS * (PACK_W * PACK_W + HIDDEN * PACK_W + PACK_W * INNER + INNER * PACK_W)
    flops += 2 * 2 * BATCH * N_HEAD * SEQ * SEQ * HEAD_DIM           # scores + ctx matmuls
    transcendentals = BATCH * N_HEAD * SEQ * SEQ + BS * INNER + 4 * BS
    bytes_accessed = (int(x2.size) + int(packed.size) + BS * PACK_W) * 4 + \
        (int(w_qkv.size) + int(w_o.size) + int(w_fc.size) + int(w_proj.size)) * 2

    out2 = pl.pallas_call(
        _block_kernel,
        out_shape=jax.ShapeDtypeStruct((B * S, PACK_W), x.dtype),
        grid=(BATCH,),                                        # one sequence per grid step
        in_specs=[
            pl.BlockSpec((SEQ, PACK_W), lambda b: (b, 0)),    # activations (per sequence)
            pl.BlockSpec((8, PACK_W), lambda b: (0, 0)),      # packed small params
            pl.BlockSpec((PACK_W, PACK_W), lambda b: (0, 0)), # w_qkv
            pl.BlockSpec((HIDDEN, PACK_W), lambda b: (0, 0)), # w_o
            pl.BlockSpec((PACK_W, INNER), lambda b: (0, 0)),  # w_fc
            pl.BlockSpec((INNER, PACK_W), lambda b: (0, 0)),  # w_proj
        ],
        out_specs=pl.BlockSpec((SEQ, PACK_W), lambda b: (b, 0)),
        compiler_params=pltpu.CompilerParams(dimension_semantics=("parallel",)),
        cost_estimate=pl.CostEstimate(flops=flops, transcendentals=transcendentals,
                                      bytes_accessed=bytes_accessed),
    )(x2, packed, w_qkv, w_o, w_fc, w_proj)
    # TODO(synk): at realistic sizes (H >= 4k) w_fc/w_proj need K-tiled BlockSpecs with a
    # reduction ("arbitrary") grid axis + f32 scratch accumulator, budgeted against the
    # 64 MiB v7x VMEM (2x double-buffering per input) via vmem_limit_bytes.
    return out2[:, :H].reshape(B, S, H)


# ----------------------------- pure-JAX reference -----------------------------
def reference_block(x, p):
    def ln(h, w, b):
        mu = jnp.mean(h, axis=-1, keepdims=True)
        var = jnp.mean((h - mu) ** 2, axis=-1, keepdims=True)
        return (h - mu) * jax.lax.rsqrt(var + EPS) * w + b

    res = x
    h = ln(x, p["ln1_w"], p["ln1_b"])
    qkv = h @ p["w_qkv"] + p["b_qkv"]
    q, k, v = jnp.split(qkv, 3, axis=-1)

    def split_heads(t):
        B, S, _ = t.shape
        return t.reshape(B, S, N_HEAD, HEAD_DIM).transpose(0, 2, 1, 3)

    qh, kh, vh = split_heads(q), split_heads(k), split_heads(v)
    scores = jnp.einsum("bhqd,bhkd->bhqk", qh, kh) / (HEAD_DIM ** 0.5)
    causal = jnp.tril(jnp.ones((SEQ, SEQ), dtype=bool))
    scores = jnp.where(causal, scores, jnp.finfo(jnp.float32).min)
    probs = jax.nn.softmax(scores, axis=-1)
    attn = jnp.einsum("bhqk,bhkd->bhqd", probs, vh)
    attn = attn.transpose(0, 2, 1, 3).reshape(x.shape)
    attn = attn @ p["w_o"] + p["b_o"]
    if M_RESIDUAL is not None:
        attn = attn * M_RESIDUAL
    h = attn + res

    res = h
    g = ln(h, p["ln2_w"], p["ln2_b"])
    g = g @ p["w_fc"] + p["b_fc"]
    g = jax.nn.gelu(g, approximate=True)
    g = g @ p["w_proj"] + p["b_proj"]
    if M_RESIDUAL is not None:
        g = g * M_RESIDUAL
    return g + res


# ----------------------------- parameter init ---------------------------------
def init_params(key):
    ks = jax.random.split(key, 12)
    std = 0.02

    def n(k, shape, scale=std):
        return (jax.random.normal(k, shape) * scale).astype(jnp.float32)

    return {
        "ln1_w": (1.0 + n(ks[0], (HIDDEN,), 0.1)).astype(jnp.float32),
        "ln1_b": n(ks[1], (HIDDEN,), 0.1),
        "w_qkv": n(ks[2], (HIDDEN, 3 * HIDDEN)),
        "b_qkv": n(ks[3], (3 * HIDDEN,)),
        "w_o":   n(ks[4], (HIDDEN, HIDDEN)),
        "b_o":   n(ks[5], (HIDDEN,)),
        "ln2_w": (1.0 + n(ks[6], (HIDDEN,), 0.1)).astype(jnp.float32),
        "ln2_b": n(ks[7], (HIDDEN,), 0.1),
        "w_fc":  n(ks[8], (HIDDEN, INNER)),
        "b_fc":  n(ks[9], (INNER,)),
        "w_proj": n(ks[10], (INNER, HIDDEN)),
        "b_proj": n(ks[11], (HIDDEN,)),
    }


if __name__ == "__main__":
    key = jax.random.PRNGKey(0)
    kx, kp = jax.random.split(key)
    x = jax.random.normal(kx, (BATCH, SEQ, HIDDEN), dtype=jnp.float32)
    params = init_params(kp)

    out = gpt_dolomite_block(x, params)
    out = jax.block_until_ready(out)

    ref = reference_block(x, params)
    assert out.shape == (BATCH, SEQ, HIDDEN)
    max_err = float(jnp.max(jnp.abs(out - ref)))
    # Tolerance reflects bf16 MXU operands (f32 accumulation, f32 reference).
    assert jnp.allclose(out, ref, atol=5e-3, rtol=5e-3), (
        f"mismatch vs reference (max abs err = {max_err})")

    print("KERNEL_OK")
</pallas_src>

<mosaic_0001>
module attributes {stable_mosaic.version = 11 : i64} {
  func.func @_block_kernel(%arg0: i32, %arg1: memref<8x128xf32, #tpu.memory_space<vmem>>, %arg2: memref<8x128xf32, #tpu.memory_space<vmem>>, %arg3: memref<128x128xbf16, #tpu.memory_space<vmem>>, %arg4: memref<32x128xbf16, #tpu.memory_space<vmem>>, %arg5: memref<128x128xbf16, #tpu.memory_space<vmem>>, %arg6: memref<128x128xbf16, #tpu.memory_space<vmem>>, %arg7: memref<8x128xf32, #tpu.memory_space<vmem>>) attributes {dimension_semantics = [#tpu.dimension_semantics<parallel>], iteration_bounds = array<i64: 2>, scalar_prefetch = 0 : i64, scratch_operands = 0 : i64, tpu.core_type = #tpu.core_type<tc>, window_params = [{transform_indices = @transform_0, window_bounds = array<i64: 8, 128>}, {pipeline_mode = #tpu.pipeline_mode<synchronous>, transform_indices = @transform_1, window_bounds = array<i64: 8, 128>}, {pipeline_mode = #tpu.pipeline_mode<synchronous>, transform_indices = @transform_2, window_bounds = array<i64: 128, 128>}, {pipeline_mode = #tpu.pipeline_mode<synchronous>, transform_indices = @transform_3, window_bounds = array<i64: 32, 128>}, {pipeline_mode = #tpu.pipeline_mode<synchronous>, transform_indices = @transform_4, window_bounds = array<i64: 128, 128>}, {pipeline_mode = #tpu.pipeline_mode<synchronous>, transform_indices = @transform_5, window_bounds = array<i64: 128, 128>}, {transform_indices = @transform_6, window_bounds = array<i64: 8, 128>}]} {
    %c0 = arith.constant 0 : index
    %c0_0 = arith.constant 0 : index
    %0 = vector.load %arg1[%c0, %c0_0] : memref<8x128xf32, #tpu.memory_space<vmem>>, vector<8x128xf32>
    %c0_1 = arith.constant 0 : index
    %c0_2 = arith.constant 0 : index
    %1 = vector.load %arg2[%c0_1, %c0_2] : memref<8x128xf32, #tpu.memory_space<vmem>>, vector<8x128xf32>
    %2 = vector.extract_strided_slice %1 {offsets = [0, 0], sizes = [1, 128], strides = [1, 1]} : vector<8x128xf32> to vector<1x128xf32>
    %3 = vector.extract_strided_slice %1 {offsets = [1, 0], sizes = [1, 128], strides = [1, 1]} : vector<8x128xf32> to vector<1x128xf32>
    %4 = vector.extract_strided_slice %1 {offsets = [3, 0], sizes = [1, 128], strides = [1, 1]} : vector<8x128xf32> to vector<1x128xf32>
    %5 = vector.extract_strided_slice %1 {offsets = [4, 0], sizes = [1, 128], strides = [1, 1]} : vector<8x128xf32> to vector<1x128xf32>
    %6 = vector.extract_strided_slice %1 {offsets = [2, 0], sizes = [1, 128], strides = [1, 1]} : vector<8x128xf32> to vector<1x128xf32>
    %7 = vector.extract_strided_slice %1 {offsets = [5, 0], sizes = [1, 128], strides = [1, 1]} : vector<8x128xf32> to vector<1x128xf32>
    %8 = vector.extract_strided_slice %1 {offsets = [6, 0], sizes = [1, 128], strides = [1, 1]} : vector<8x128xf32> to vector<1x128xf32>
    %9 = vector.extract_strided_slice %1 {offsets = [7, 0], sizes = [1, 128], strides = [1, 1]} : vector<8x128xf32> to vector<1x128xf32>
    %cst = arith.constant dense<0.000000e+00> : vector<8xf32>
    %10 = vector.multi_reduction <add>, %0, %cst [1] : vector<8x128xf32> to vector<8xf32>
    %11 = vector.shape_cast %10 : vector<8xf32> to vector<8x1xf32>
    %12 = arith.mulf %0, %0 : vector<8x128xf32>
    %cst_3 = arith.constant dense<0.000000e+00> : vector<8xf32>
    %13 = vector.multi_reduction <add>, %12, %cst_3 [1] : vector<8x128xf32> to vector<8xf32>
    %14 = vector.shape_cast %13 : vector<8xf32> to vector<8x1xf32>
    %cst_4 = arith.constant 3.125000e-02 : f32
    %15 = vector.broadcast %cst_4 : f32 to vector<8x1xf32>
    %16 = arith.mulf %11, %15 : vector<8x1xf32>
    %cst_5 = arith.constant 3.125000e-02 : f32
    %17 = vector.broadcast %cst_5 : f32 to vector<8x1xf32>
    %18 = arith.mulf %14, %17 : vector<8x1xf32>
    %19 = arith.mulf %16, %16 : vector<8x1xf32>
    %20 = arith.subf %18, %19 : vector<8x1xf32>
    %21 = vector.broadcast %16 : vector<8x1xf32> to vector<8x128xf32>
    %22 = arith.subf %0, %21 : vector<8x128xf32>
    %cst_6 = arith.constant 9.99999974E-6 : f32
    %23 = vector.broadcast %cst_6 : f32 to vector<8x1xf32>
    %24 = arith.addf %20, %23 : vector<8x1xf32>
    %25 = math.rsqrt %24 : vector<8x1xf32>
    %26 = vector.broadcast %25 : vector<8x1xf32> to vector<8x128xf32>
    %27 = arith.mulf %22, %26 : vector<8x128xf32>
    %28 = vector.broadcast %2 : vector<1x128xf32> to vector<8x128xf32>
    %29 = arith.mulf %27, %28 : vector<8x128xf32>
    %30 = vector.broadcast %3 : vector<1x128xf32> to vector<8x128xf32>
    %31 = arith.addf %29, %30 : vector<8x128xf32>
    %32 = arith.truncf %31 : vector<8x128xf32> to vector<8x128xbf16>
    %c0_7 = arith.constant 0 : index
    %c0_8 = arith.constant 0 : index
    %33 = vector.load %arg3[%c0_7, %c0_8] : memref<128x128xbf16, #tpu.memory_space<vmem>>, vector<128x128xbf16>
    %cst_9 = arith.constant dense<0.000000e+00> : vector<8x128xf32>
    %34 = tpu.matmul %32, %33, %cst_9 {dimension_numbers = #tpu.dot_dimension_numbers<[1], [0], [0], [1], [0, 0, 1, 1], [], []>} : vector<8x128xbf16>, vector<128x128xbf16>, vector<8x128xf32> -> vector<8x128xf32>
    %35 = vector.broadcast %9 : vector<1x128xf32> to vector<8x128xf32>
    %36 = arith.addf %34, %35 : vector<8x128xf32>
    %37 = vector.extract_strided_slice %36 {offsets = [0, 0], sizes = [8, 32], strides = [1, 1]} : vector<8x128xf32> to vector<8x32xf32>
    %38 = arith.truncf %37 : vector<8x32xf32> to vector<8x32xbf16>
    %39 = vector.shape_cast %38 : vector<8x32xbf16> to vector<8x4x8xbf16>
    %40 = tpu.transpose %39, [1, 0, 2] : vector<8x4x8xbf16> -> vector<4x8x8xbf16>
    %41 = vector.extract_strided_slice %36 {offsets = [0, 32], sizes = [8, 32], strides = [1, 1]} : vector<8x128xf32> to vector<8x32xf32>
    %42 = arith.truncf %41 : vector<8x32xf32> to vector<8x32xbf16>
    %43 = vector.shape_cast %42 : vector<8x32xbf16> to vector<8x4x8xbf16>
    %44 = tpu.transpose %43, [1, 0, 2] : vector<8x4x8xbf16> -> vector<4x8x8xbf16>
    %45 = vector.extract_strided_slice %36 {offsets = [0, 64], sizes = [8, 32], strides = [1, 1]} : vector<8x128xf32> to vector<8x32xf32>
    %46 = arith.truncf %45 : vector<8x32xf32> to vector<8x32xbf16>
    %47 = vector.shape_cast %46 : vector<8x32xbf16> to vector<8x4x8xbf16>
    %48 = tpu.transpose %47, [1, 0, 2] : vector<8x4x8xbf16> -> vector<4x8x8xbf16>
    %49 = tpu.iota {dimensions = array<i32: 0>} : vector<8x8xi32>
    %50 = tpu.iota {dimensions = array<i32: 1>} : vector<8x8xi32>
    %51 = arith.cmpi sle, %50, %49 : vector<8x8xi32>
    %cst_10 = arith.constant 0.000000e+00 : f32
    %cst_11 = arith.constant -1.000000e+30 : f32
    %52 = vector.broadcast %cst_10 : f32 to vector<8x8xf32>
    %53 = vector.broadcast %cst_11 : f32 to vector<8x8xf32>
    %54 = arith.select %51, %52, %53 : vector<8x8xi1>, vector<8x8xf32>
    "tpu.trace_start"() <{level = 10 : i32, message = "hqd,hkd->hqk"}> : () -> ()
    %cst_12 = arith.constant dense<0.000000e+00> : vector<4x8x8xf32>
    %55 = tpu.matmul %40, %44, %cst_12 {dimension_numbers = #tpu.dot_dimension_numbers<[2], [2], [1], [1], [0, 0, 0, 1, 1, 1], [0], [0]>} : vector<4x8x8xbf16>, vector<4x8x8xbf16>, vector<4x8x8xf32> -> vector<4x8x8xf32>
    "tpu.trace_stop"() : () -> ()
    %cst_13 = arith.constant 0.353553385 : f32
    %56 = vector.broadcast %cst_13 : f32 to vector<4x8x8xf32>
    %57 = arith.mulf %55, %56 : vector<4x8x8xf32>
    %58 = vector.shape_cast %54 : vector<8x8xf32> to vector<1x8x8xf32>
    %59 = vector.broadcast %58 : vector<1x8x8xf32> to vector<4x8x8xf32>
    %60 = arith.addf %57, %59 : vector<4x8x8xf32>
    %cst_14 = arith.constant dense<0xFF800000> : vector<4x8xf32>
    %61 = vector.multi_reduction <maximumf>, %60, %cst_14 [2] : vector<4x8x8xf32> to vector<4x8xf32>
    %62 = vector.shape_cast %61 : vector<4x8xf32> to vector<4x8x1xf32>
    %63 = vector.broadcast %62 : vector<4x8x1xf32> to vector<4x8x8xf32>
    %64 = arith.subf %60, %63 : vector<4x8x8xf32>
    %65 = math.exp %64 : vector<4x8x8xf32>
    %cst_15 = arith.constant dense<0.000000e+00> : vector<4x8xf32>
    %66 = vector.multi_reduction <add>, %65, %cst_15 [2] : vector<4x8x8xf32> to vector<4x8xf32>
    %67 = vector.shape_cast %66 : vector<4x8xf32> to vector<4x8x1xf32>
    %68 = vector.broadcast %67 : vector<4x8x1xf32> to vector<4x8x8xf32>
    %69 = arith.divf %65, %68 : vector<4x8x8xf32>
    %70 = arith.truncf %69 : vector<4x8x8xf32> to vector<4x8x8xbf16>
    "tpu.trace_start"() <{level = 10 : i32, message = "hqk,hkd->hqd"}> : () -> ()
    %cst_16 = arith.constant dense<0.000000e+00> : vector<4x8x8xf32>
    %71 = tpu.matmul %70, %48, %cst_16 {dimension_numbers = #tpu.dot_dimension_numbers<[2], [1], [1], [2], [0, 0, 0, 1, 1, 2], [0], [0]>} : vector<4x8x8xbf16>, vector<4x8x8xbf16>, vector<4x8x8xf32> -> vector<4x8x8xf32>
    "tpu.trace_stop"() : () -> ()
    %72 = tpu.transpose %71, [1, 0, 2] : vector<4x8x8xf32> -> vector<8x4x8xf32>
    %73 = vector.shape_cast %72 : vector<8x4x8xf32> to vector<8x32xf32>
    %74 = arith.truncf %73 : vector<8x32xf32> to vector<8x32xbf16>
    %c0_17 = arith.constant 0 : index
    %c0_18 = arith.constant 0 : index
    %75 = vector.load %arg4[%c0_17, %c0_18] : memref<32x128xbf16, #tpu.memory_space<vmem>>, vector<32x128xbf16>
    %cst_19 = arith.constant dense<0.000000e+00> : vector<8x128xf32>
    %76 = tpu.matmul %74, %75, %cst_19 {dimension_numbers = #tpu.dot_dimension_numbers<[1], [0], [0], [1], [0, 0, 1, 1], [], []>} : vector<8x32xbf16>, vector<32x128xbf16>, vector<8x128xf32> -> vector<8x128xf32>
    %77 = vector.broadcast %6 : vector<1x128xf32> to vector<8x128xf32>
    %78 = arith.addf %76, %77 : vector<8x128xf32>
    %79 = arith.addf %78, %0 : vector<8x128xf32>
    %cst_20 = arith.constant dense<0.000000e+00> : vector<8xf32>
    %80 = vector.multi_reduction <add>, %79, %cst_20 [1] : vector<8x128xf32> to vector<8xf32>
    %81 = vector.shape_cast %80 : vector<8xf32> to vector<8x1xf32>
    %82 = arith.mulf %79, %79 : vector<8x128xf32>
    %cst_21 = arith.constant dense<0.000000e+00> : vector<8xf32>
    %83 = vector.multi_reduction <add>, %82, %cst_21 [1] : vector<8x128xf32> to vector<8xf32>
    %84 = vector.shape_cast %83 : vector<8xf32> to vector<8x1xf32>
    %cst_22 = arith.constant 3.125000e-02 : f32
    %85 = vector.broadcast %cst_22 : f32 to vector<8x1xf32>
    %86 = arith.mulf %81, %85 : vector<8x1xf32>
    %cst_23 = arith.constant 3.125000e-02 : f32
    %87 = vector.broadcast %cst_23 : f32 to vector<8x1xf32>
    %88 = arith.mulf %84, %87 : vector<8x1xf32>
    %89 = arith.mulf %86, %86 : vector<8x1xf32>
    %90 = arith.subf %88, %89 : vector<8x1xf32>
    %91 = vector.broadcast %86 : vector<8x1xf32> to vector<8x128xf32>
    %92 = arith.subf %79, %91 : vector<8x128xf32>
    %cst_24 = arith.constant 9.99999974E-6 : f32
    %93 = vector.broadcast %cst_24 : f32 to vector<8x1xf32>
    %94 = arith.addf %90, %93 : vector<8x1xf32>
    %95 = math.rsqrt %94 : vector<8x1xf32>
    %96 = vector.broadcast %95 : vector<8x1xf32> to vector<8x128xf32>
    %97 = arith.mulf %92, %96 : vector<8x128xf32>
    %98 = vector.broadcast %4 : vector<1x128xf32> to vector<8x128xf32>
    %99 = arith.mulf %97, %98 : vector<8x128xf32>
    %100 = vector.broadcast %5 : vector<1x128xf32> to vector<8x128xf32>
    %101 = arith.addf %99, %100 : vector<8x128xf32>
    %102 = arith.truncf %101 : vector<8x128xf32> to vector<8x128xbf16>
    %c0_25 = arith.constant 0 : index
    %c0_26 = arith.constant 0 : index
    %103 = vector.load %arg5[%c0_25, %c0_26] : memref<128x128xbf16, #tpu.memory_space<vmem>>, vector<128x128xbf16>
    %cst_27 = arith.constant dense<0.000000e+00> : vector<8x128xf32>
    %104 = tpu.matmul %102, %103, %cst_27 {dimension_numbers = #tpu.dot_dimension_numbers<[1], [0], [0], [1], [0, 0, 1, 1], [], []>} : vector<8x128xbf16>, vector<128x128xbf16>, vector<8x128xf32> -> vector<8x128xf32>
    %105 = vector.broadcast %8 : vector<1x128xf32> to vector<8x128xf32>
    %106 = arith.addf %104, %105 : vector<8x128xf32>
    %107 = arith.mulf %106, %106 : vector<8x128xf32>
    %108 = arith.mulf %106, %107 : vector<8x128xf32>
    %cst_28 = arith.constant 4.471500e-02 : f32
    %109 = vector.broadcast %cst_28 : f32 to vector<8x128xf32>
    %110 = arith.mulf %109, %108 : vector<8x128xf32>
    %111 = arith.addf %106, %110 : vector<8x128xf32>
    %cst_29 = arith.constant 0.797884583 : f32
    %112 = vector.broadcast %cst_29 : f32 to vector<8x128xf32>
    %113 = arith.mulf %112, %111 : vector<8x128xf32>
    %114 = math.tanh %113 : vector<8x128xf32>
    %cst_30 = arith.constant 1.000000e+00 : f32
    %115 = vector.broadcast %cst_30 : f32 to vector<8x128xf32>
    %116 = arith.addf %115, %114 : vector<8x128xf32>
    %cst_31 = arith.constant 5.000000e-01 : f32
    %117 = vector.broadcast %cst_31 : f32 to vector<8x128xf32>
    %118 = arith.mulf %117, %116 : vector<8x128xf32>
    %119 = arith.mulf %106, %118 : vector<8x128xf32>
    %120 = arith.truncf %119 : vector<8x128xf32> to vector<8x128xbf16>
    %c0_32 = arith.constant 0 : index
    %c0_33 = arith.constant 0 : index
    %121 = vector.load %arg6[%c0_32, %c0_33] : memref<128x128xbf16, #tpu.memory_space<vmem>>, vector<128x128xbf16>
    %cst_34 = arith.constant dense<0.000000e+00> : vector<8x128xf32>
    %122 = tpu.matmul %120, %121, %cst_34 {dimension_numbers = #tpu.dot_dimension_numbers<[1], [0], [0], [1], [0, 0, 1, 1], [], []>} : vector<8x128xbf16>, vector<128x128xbf16>, vector<8x128xf32> -> vector<8x128xf32>
    %123 = vector.broadcast %7 : vector<1x128xf32> to vector<8x128xf32>
    %124 = arith.addf %122, %123 : vector<8x128xf32>
    %125 = arith.addf %124, %79 : vector<8x128xf32>
    %c0_35 = arith.constant 0 : index
    %c0_36 = arith.constant 0 : index
    %126 = vector.load %arg7[%c0_35, %c0_36] : memref<8x128xf32, #tpu.memory_space<vmem>>, vector<8x128xf32>
    tpu.vector_store %arg7[%c0_35, %c0_36], %125 {strides = array<i32>} : memref<8x128xf32, #tpu.memory_space<vmem>>, vector<8x128xf32>,
    return
  }
  func.func @transform_0(%arg0: i32) -> (i32, i32) {
    %c0_i32 = arith.constant 0 : i32
    %c0_i32_0 = arith.constant 0 : i32
    return %arg0, %c0_i32 : i32, i32
  }
  func.func @transform_1(%arg0: i32) -> (i32, i32) {
    %c0_i32 = arith.constant 0 : i32
    %c0_i32_0 = arith.constant 0 : i32
    %c0_i32_1 = arith.constant 0 : i32
    return %c0_i32, %c0_i32_0 : i32, i32
  }
  func.func @transform_2(%arg0: i32) -> (i32, i32) {
    %c0_i32 = arith.constant 0 : i32
    %c0_i32_0 = arith.constant 0 : i32
    %c0_i32_1 = arith.constant 0 : i32
    return %c0_i32, %c0_i32_0 : i32, i32
  }
  func.func @transform_3(%arg0: i32) -> (i32, i32) {
    %c0_i32 = arith.constant 0 : i32
    %c0_i32_0 = arith.constant 0 : i32
    %c0_i32_1 = arith.constant 0 : i32
    return %c0_i32, %c0_i32_0 : i32, i32
  }
  func.func @transform_4(%arg0: i32) -> (i32, i32) {
    %c0_i32 = arith.constant 0 : i32
    %c0_i32_0 = arith.constant 0 : i32
    %c0_i32_1 = arith.constant 0 : i32
    return %c0_i32, %c0_i32_0 : i32, i32
  }
  func.func @transform_5(%arg0: i32) -> (i32, i32) {
    %c0_i32 = arith.constant 0 : i32
    %c0_i32_0 = arith.constant 0 : i32
    %c0_i32_1 = arith.constant 0 : i32
    return %c0_i32, %c0_i32_0 : i32, i32
  }
  func.func @transform_6(%arg0: i32) -> (i32, i32) {
    %c0_i32 = arith.constant 0 : i32
    %c0_i32_0 = arith.constant 0 : i32
    return %arg0, %c0_i32 : i32, i32
  }
}

</mosaic_0001>

<bundles_post_ra>
// kernel: tpu_custom_call.1
= control target key start
LH: loop header
LB: loop body
LE: loop exit
PB: predicated region body
PF: predicated region fallthrough
CT: control target
= control target key end

     0   :  { %11 = vsyncpa [#allocation3], 0  ;;  %s3271_s0 = inlined_call_operand.hbm [shape: f32[16,128], index: 0, kind: input, shape index: {}]   ;;  %s3272_s1 = inlined_call_operand.hbm [shape: f32[8,128], index: 1, kind: input, shape index: {}]   ;;  %s3273_s2 = inlined_call_operand.hbm [shape: bf16[128,128], index: 2, kind: input, shape index: {}]   ;;  %s3274_s3 = inlined_call_operand.hbm [shape: bf16[32,128], index: 3, kind: input, shape index: {}]   ;;  %s3275_s4 = inlined_call_operand.hbm [shape: bf16[128,128], index: 4, kind: input, shape index: {}]   ;;  %s3276_s5 = inlined_call_operand.hbm [shape: bf16[128,128], index: 5, kind: input, shape index: {}]   ;;  %s3277_s6 = inlined_call_operand.hbm [shape: f32[16,128], index: 6, kind: output, shape index: {}]  }
   0x1   :  { %13 = vsyncpa [#allocation3 + $0x1], 0 }
   0x2   :  { %14 = vsyncpa [#allocation6], 0 }
   0x3   :  { %15 = vsyncpa [#allocation9], 0 }
   0x4   :  { %16 = vsyncpa [#allocation12], 0 }
   0x5   :  { %17 = vsyncpa [#allocation4], 0 }
   0x6   :  { %19 = vsyncpa [#allocation4 + $0x1], 0  ;;  %s2709_s21 = smov 0   ;;  %s2711_s22 = smov 0  }
   0x7   :  { %s2713_s23 = smov 0   ;;  %s2715_s24 = smov 0  }
   0x8 LB: > { %s2651_s25 = smov [#allocation5]   ;;  %s2730_s27 = sadd.s32 4294967295, %s2649_s24   ;;  %s2649_s24 = sphi %s2715_s24, %s3302_s24   ;;  %s2645_s23 = sphi %s2713_s23, %s3301_s23   ;;  %s2641_s22 = sphi %s2711_s22, %s3300_s22   ;;  %s2637_s21 = sphi %s2709_s21, %s3299_s21  }
   0x9   : > { %s200_s26 = sshll.u32 %s2651_s25, 4  ;;  %p2018_p0 = scmp.ge.s32.totalorder %s2649_s24, 1  ;;  %s201_s26 = int_to_ptr.vmem [resolvable:$true] %s200_s26 }
   0xa   : > { %p3278_p1 = scmp.eq.s32.totalorder %s2730_s27, 0  ;;  %p187_p2 = scmp.lt.s32.totalorder %s2649_s24, 3 }
   0xb   : > { %s2652_s29 = smov [#allocation8]   ;;  %s2653_s8 = smov [#allocation7]  }
   0xc   : > { %p2735_p3 = pnand %p2018_p0, %p187_p2  ;;  %s223_s30 = sshll.u32 %s2652_s29, 4  ;;  %s2748_s30 = int_to_ptr.vmem [resolvable:$true] %s223_s30 }
   0xd   : > { %s210_s9 = sshll.u32 %s2653_s8, 4  ;;  %s2401_s12 = scalar_lea.hbm %s3272_s1, 128  ;;  %s2750_s9 = int_to_ptr.vmem [resolvable:$true] %s210_s9 }
   0xe   : > { %s3281_s28 = scalar_select %p2735_p3, 1, 0 }
   0xf   : > { %p2262_p5 = pneg %p2735_p3  ;;  %p2402_p7 = scmp.ne.s32.totalorder %s3272_s1, %s2401_s12 }
  0x10   : > { %p2408_p11 = scmp.lt.u32.totalorder %s2401_s12, %s3272_s1 }
  0x11   : > { %p2744_p6 = pnand %p2262_p5, %p3278_p1 }
  0x13   : > { %p2760_p8 = pneg %p2744_p6 }
  0x15   : > { %p2404_p9 = pnand %p2760_p8, %p2402_p7 }
  0x17   : > { %p2405_p10 = pneg %p2404_p9 }
  0x19   : > { %p2410_p12 = pnand %p2408_p11, %p2405_p10 }
  0x1b   : > { %2413 = shalt.err (!%p2410_p12)
}
  0x1c   : > { %s2414_s18 = scalar_lea.vmem %s201_s26, 128  ;;  %p2422_p5 = scmp.lt.s32.totalorder %s201_s26, %s201_s26 }
  0x1d   : > { %p2415_p13 = scmp.ne.s32.totalorder %s201_s26, %s2414_s18  ;;  %p2423_p4 = scmp.lt.s32.totalorder %s2414_s18, %s2414_s18 }
  0x1f   : > { %p2417_p0 = pnand %p2415_p13, %p2760_p8  ;;  %p2424_p1 = por %p2423_p4, %p2422_p5 }
  0x21   : > { %p2418_p2 = pneg %p2417_p0 }
  0x23   : > { %p2425_p3 = pnand %p2424_p1, %p2418_p2 }
  0x25   : > { %2428 = shalt.err (!%p2425_p3)
}
  0x26   : > { %2265 = dma.hbm_to_vmem [thread:$0]  (!%p2744_p6), %s3272_s1, 128, %s201_s26, [#allocation6]  }
  0x27   : > { %s2429_s8 = scalar_lea.hbm %s3274_s3, 256 }
  0x28   : > { %p2430_p7 = scmp.ne.s32.totalorder %s3274_s3, %s2429_s8  ;;  %p2436_p1 = scmp.lt.u32.totalorder %s2429_s8, %s3274_s3 }
  0x2a   : > { %p2432_p9 = pnand %p2430_p7, %p2760_p8 }
  0x2c   : > { %p2433_p4 = pneg %p2432_p9 }
  0x2e   : > { %p2438_p3 = pnand %p2436_p1, %p2433_p4 }
  0x30   : > { %2441 = shalt.err (!%p2438_p3)
}
  0x31   : > { %s2442_s26 = scalar_lea.vmem %s2748_s30, 256  ;;  %p2450_p13 = scmp.lt.s32.totalorder %s2748_s30, %s2748_s30 }
  0x32   : > { %p2443_p10 = scmp.ne.s32.totalorder %s2748_s30, %s2442_s26  ;;  %p2451_p0 = scmp.lt.s32.totalorder %s2442_s26, %s2442_s26 }
  0x34   : > { %p2445_p11 = pnand %p2443_p10, %p2760_p8  ;;  %p2452_p2 = por %p2451_p0, %p2450_p13 }
  0x36   : > { %p2446_p12 = pneg %p2445_p11 }
  0x38   : > { %p2453_p5 = pnand %p2452_p2, %p2446_p12 }
  0x3a   : > { %2456 = shalt.err (!%p2453_p5)
}
  0x3b   : > { %s2654_s14 = smov 64   ;;  %s2655_s16 = smov 4  }
  0x3c   : > { %2271 = dma.hbm_to_vmem [thread:$0]  (!%p2744_p6), %s3274_s3, 256, %s2748_s30, [#allocation9], %s2654_s14, %s2654_s14, %s2655_s16  }
  0x3d   : > { %s2457_s25 = scalar_lea.hbm %s3273_s2, 1024 }
  0x3e   : > { %p2458_p7 = scmp.ne.s32.totalorder %s3273_s2, %s2457_s25  ;;  %p2464_p1 = scmp.lt.u32.totalorder %s2457_s25, %s3273_s2 }
  0x40   : > { %p2460_p9 = pnand %p2458_p7, %p2760_p8 }
  0x42   : > { %p2461_p4 = pneg %p2460_p9 }
  0x44   : > { %p2466_p3 = pnand %p2464_p1, %p2461_p4 }
  0x46   : > { %2469 = shalt.err (!%p2466_p3)
}
  0x47   : > { %s2470_s30 = scalar_lea.vmem %s2750_s9, 1024  ;;  %p2478_p13 = scmp.lt.s32.totalorder %s2750_s9, %s2750_s9 }
  0x48   : > { %p2471_p10 = scmp.ne.s32.totalorder %s2750_s9, %s2470_s30  ;;  %p2479_p0 = scmp.lt.s32.totalorder %s2470_s30, %s2470_s30 }
  0x4a   : > { %p2473_p11 = pnand %p2471_p10, %p2760_p8  ;;  %p2480_p2 = por %p2479_p0, %p2478_p13 }
  0x4c   : > { %p2474_p12 = pneg %p2473_p11 }
  0x4e   : > { %p2481_p5 = pnand %p2480_p2, %p2474_p12 }
  0x50   : > { %2484 = shalt.err (!%p2481_p5)
}
  0x51   : > { %2268 = dma.hbm_to_vmem [thread:$0]  (!%p2744_p6), %s3273_s2, 1024, %s2750_s9, [#allocation6], %s2654_s14, %s2654_s14, %s2655_s16  }
  0x52   : > { %s2656_s26 = smov [#allocation10]   ;;  %s2657_s18 = smov [#allocation11]  }
  0x53   : > { %s236_s17 = sshll.u32 %s2656_s26, 4  ;;  %s249_s19 = sshll.u32 %s2657_s18, 4  ;;  %s237_s17 = int_to_ptr.vmem [resolvable:$true] %s236_s17  ;;  %s250_s19 = int_to_ptr.vmem [resolvable:$true] %s249_s19 }
  0x54   : > { %s2485_s29 = scalar_lea.hbm %s3275_s4, 1024 }
  0x55   : > { %p2486_p7 = scmp.ne.s32.totalorder %s3275_s4, %s2485_s29  ;;  %p2492_p1 = scmp.lt.u32.totalorder %s2485_s29, %s3275_s4 }
  0x57   : > { %p2488_p9 = pnand %p2486_p7, %p2760_p8 }
  0x59   : > { %p2489_p4 = pneg %p2488_p9 }
  0x5b   : > { %p2494_p3 = pnand %p2492_p1, %p2489_p4 }
  0x5d   : > { %2497 = shalt.err (!%p2494_p3)
}
  0x5e   : > { %s2498_s9 = scalar_lea.vmem %s237_s17, 1024  ;;  %p2506_p13 = scmp.lt.s32.totalorder %s237_s17, %s237_s17 }
  0x5f   : > { %p2499_p10 = scmp.ne.s32.totalorder %s237_s17, %s2498_s9  ;;  %p2507_p0 = scmp.lt.s32.totalorder %s2498_s9, %s2498_s9 }
  0x61   : > { %p2501_p11 = pnand %p2499_p10, %p2760_p8  ;;  %p2508_p2 = por %p2507_p0, %p2506_p13 }
  0x63   : > { %p2502_p12 = pneg %p2501_p11 }
  0x65   : > { %p2509_p5 = pnand %p2508_p2, %p2502_p12 }
  0x67   : > { %2512 = shalt.err (!%p2509_p5)
}
  0x68   : > { %2274 = dma.hbm_to_vmem [thread:$0]  (!%p2744_p6), %s3275_s4, 1024, %s237_s17, [#allocation9], %s2654_s14, %s2654_s14, %s2655_s16  }
  0x69   : > { %s2513_s20 = scalar_lea.hbm %s3276_s5, 1024 }
  0x6a   : > { %p2514_p7 = scmp.ne.s32.totalorder %s3276_s5, %s2513_s20  ;;  %p2520_p1 = scmp.lt.u32.totalorder %s2513_s20, %s3276_s5 }
  0x6c   : > { %p2516_p9 = pnand %p2514_p7, %p2760_p8 }
  0x6e   : > { %p2517_p4 = pneg %p2516_p9 }
  0x70   : > { %p2522_p3 = pnand %p2520_p1, %p2517_p4 }
  0x72   : > { %2525 = shalt.err (!%p2522_p3)
}
  0x73   : > { %s2526_s11 = scalar_lea.vmem %s250_s19, 1024  ;;  %p2534_p13 = scmp.lt.s32.totalorder %s250_s19, %s250_s19 }
  0x74   : > { %p2527_p10 = scmp.ne.s32.totalorder %s250_s19, %s2526_s11  ;;  %p2535_p0 = scmp.lt.s32.totalorder %s2526_s11, %s2526_s11 }
  0x76   : > { %p2529_p11 = pnand %p2527_p10, %p2760_p8  ;;  %p2536_p2 = por %p2535_p0, %p2534_p13 }
  0x78   : > { %p2530_p12 = pneg %p2529_p11 }
  0x7a   : > { %p2537_p5 = pnand %p2536_p2, %p2530_p12 }
  0x7c   : > { %2540 = shalt.err (!%p2537_p5)
}
  0x7d   : > { %2277 = dma.hbm_to_vmem [thread:$0]  (!%p2744_p6), %s3276_s5, 1024, %s250_s19, [#allocation12], %s2654_s14, %s2654_s14, %s2655_s16  }
  0x7e   : > { %s2017_s7 = sadd.s32 4294967294, %s2649_s24   ;;  %s2872_s15 = sadd.s32 1, %s2649_s24  }
  0x7f   : > { %s32_s9 = sadd.s32 1, %s2645_s23  ;;  %s29_s12 = ssub.s32 %s2649_s24, %s2872_s15 }
  0x80   : > { %p39_p8 = scmp.ne.s32.totalorder %s2645_s23, %s2641_s22  ;;  %p30_p7 = scmp.eq.s32.totalorder %s29_s12, 0 }
  0x81   : > { %p40_p9 = scmp.eq.s32.totalorder %s2649_s24, 0  ;;  %p45_p4 = scmp.ne.s32.totalorder %s2641_s22, %s2637_s21 }
  0x82   : > { %p174_p1 = scmp.eq.s32.totalorder %s2730_s27, 1  ;;  %p3284_p10 = scmp.eq.s32.totalorder %s2730_s27, 0 }
  0x83   : > { %s2884_s13 = scalar_select %p30_p7, %s2645_s23, %s32_s9  }
  0x84   : > { %p41_p3 = por %p40_p9, %p39_p8  ;;  %p2888_p11 = por %p3284_p10, %p45_p4 }
  0x85   : > { %p2892_p6 = por %p174_p1, %p39_p8  ;;  %p180_p12 = scmp.eq.s32.totalorder %s2017_s7, 1 }
  0x86   : > { %p2291_p13 = scmp.lt.s32.totalorder %s2649_s24, 2  ;;  %s263_s16 = sand.u32 1, %s2645_s23  }
  0x87   : > { %s3286_s14 = scalar_select %p2892_p6, 1, 0 }
  0x88   : > { %p2898_p0 = por %p180_p12, %p45_p4  ;;  %s2025_s18 = sshll.u32 %s263_s16, 3 }
  0x89   : > { %s2026_s20 = sshll.u32 %s2649_s24, 7  ;;  %s267_s10 = scalar_lea.vmem [#allocation2], %s2025_s18 }
  0x8a   : > { %s3287_s19 = scalar_select %p2898_p0, 1, 0 }
  0x8b   : > { %s2906_s8 = scalar_lea.hbm %s3271_s0, %s2026_s20  ;;  %s274_s11 = sshll.u32 %s267_s10, 4  ;;  %s2912_s11 = int_to_ptr.vmem [resolvable:$true] %s274_s11 }
  0x8c   : > { %p2908_p2 = pnand %p2291_p13, %p41_p3  ;;  %s264_s30 = scalar_lea.sflag [#allocation3], %s263_s16 }
  0x8d   : > { %s2541_s7 = scalar_lea.hbm %s2906_s8, 128  ;;  %s2546_s18 = scalar_lea.hbm %s3271_s0, 256 }
  0x8e   : > { %p2542_p5 = scmp.ne.s32.totalorder %s2906_s8, %s2541_s7  ;;  %p2543_p8 = pneg %p2908_p2 }
  0x8f   : > { %p2547_p4 = scmp.lt.u32.totalorder %s2906_s8, %s3271_s0  ;;  %p2548_p1 = scmp.lt.u32.totalorder %s2546_s18, %s2541_s7 }
  0x90   : > { %p2544_p7 = pnand %p2543_p8, %p2542_p5  ;;  %p2550_p10 = scmp.lt.u32.totalorder %s2541_s7, %s2906_s8 }
  0x91   : > { %p2549_p3 = por %p2548_p1, %p2547_p4 }
  0x92   : > { %p2545_p9 = pneg %p2544_p7 }
  0x93   : > { %p2551_p12 = por %p2550_p10, %p2549_p3 }
  0x95   : > { %p2552_p13 = pnand %p2551_p12, %p2545_p9 }
  0x97   : > { %2555 = shalt.err (!%p2552_p13)
}
  0x98   : > { %s2556_s16 = scalar_lea.vmem %s2912_s11, 128  ;;  %s2658_s29 = smov [#allocation2]  }
  0x99   : > { %p2557_p5 = scmp.ne.s32.totalorder %s2912_s11, %s2556_s16  ;;  %s2561_s10 = sshll.u32 %s2658_s29, 4  ;;  %s2562_s10 = int_to_ptr.vmem [resolvable:$false] %s2561_s10 }
  0x9a   : > { %s2563_s9 = scalar_lea.vmem %s2562_s10, 256  ;;  %p2564_p6 = scmp.lt.s32.totalorder %s2912_s11, %s2562_s10 }
  0x9b   : > { %p2559_p7 = pnand %p2557_p5, %p2543_p8  ;;  %p2565_p4 = scmp.lt.s32.totalorder %s2563_s9, %s2556_s16 }
  0x9d   : > { %p2560_p0 = pneg %p2559_p7  ;;  %p2566_p1 = por %p2565_p4, %p2564_p6 }
  0x9f   : > { %p2567_p3 = pnand %p2566_p1, %p2560_p0 }
  0xa1   : > { %2570 = shalt.err (!%p2567_p3)
}
  0xa2   : > { %2281 = dma.hbm_to_vmem [thread:$0]  (!%p2908_p2), %s2906_s8, 128, %s2912_s11, %s264_s30  }
  0xa3   : > { %p3289_p9 = scmp.ne.s32.totalorder %s3281_s28, 0 }
  0xa4   : > { %s2942_s7 = sand.u32 (!%p3289_p9), 1, %s2641_s22  }
  0xa5   : > { %283 = sbr.rel (%p3289_p9) target bundleno = 2644 (0xa54), region = 44  ;;  %s2028_s12 = sshll.u32 (!%p3289_p9), %s2942_s7, 3 }
  0xa6   : > { %s286_s18 = scalar_lea.sflag (!%p3289_p9), [#allocation3], %s2942_s7  ;;  %s2948_s20 = scalar_lea.vmem (!%p3289_p9), [#allocation2], %s2028_s12 }
  0xac   : > { %2616 = dma.done.wait (%p2888_p11), %s286_s18, 128  }
  0xad   : > { %2618 = vsyncadd (%p2888_p11), %s286_s18, 4294967168  ;;  %p3290_p6 = scmp.eq.s32.totalorder %s2730_s27, 0 }
  0xaf   : > { %2620 = dma.done.wait (%p3290_p6), [#allocation6], 1152   ;;  %p3291_p0 = pmov %p3290_p6 }
  0xb1   : > { %2622 = vsyncadd (%p3291_p0), [#allocation6], 4294966144  ;;  %p3292_p2 = pmov %p3291_p0 }
  0xb2   : > { %p3293_p8 = pmov %p3291_p0 }
  0xb3   : > { %2624 = dma.done.wait (%p3292_p2), [#allocation9], 1280  }
  0xb4   : > { %2626 = vsyncadd (%p3293_p8), [#allocation9], 4294966016  ;;  %p3294_p10 = pmov %p3291_p0 }
  0xb5   : > { %p3295_p12 = pmov %p3291_p0 }
  0xb6   : > { %2628 = dma.done.wait (%p3294_p10), [#allocation12], 1024  }
  0xb7   : > { %2630 = vsyncadd (%p3295_p12), [#allocation12], 4294966272  ;;  %v2659_v0 = vmov 0.0   ;;  %v339_v1 = vld [vmem:[%s2948_s20] sm:$0xff]  ;;  %v2351_v3 = vld [vmem:[#allocation7] sm:$0xff]   ;;  %vm2660_vm0 = vmmov 0   ;;  %v354_v17 = vlaneseq }
  0xb8   : > { %2122 = vmatprep.subr.bf16.mxu0 %v2659_v0  ;;  %2142 = vmatprep.subr.bf16.mxu1 %v2659_v0  ;;  %v343_v2 = vmul.f32 %v339_v1, %v339_v1  ;;  %v2352_v4 = vld [vmem:[#allocation7 + $0x8] sm:$0xff]   ;;  %v2353_v5 = vld [vmem:[#allocation7 + $0x10] sm:$0xff]   ;;  %v2354_v6 = vld [vmem:[#allocation7 + $0x18] sm:$0xff]   ;;  %s2661_s28 = smov 104   ;;  %s2662_s26 = smov 120   ;;  %vm988_vm1 = vcmask 64512  }
  0xb9   : > { %341 = vadd.xlane.f32.xlu0 %v339_v1  ;;  %2123 = vmatpush3.bf16.msra.mxu0 %v2351_v3  ;;  %v2355_v7 = vld [vmem:[#allocation7 + $0x20] sm:$0xff]   ;;  %v2356_v8 = vld [vmem:[#allocation7 + $0x28] sm:$0xff]   ;;  %v2357_v9 = vld [vmem:[#allocation7 + $0x30] sm:$0xff]   ;;  %v2982_v19 = vshrl.u32 %v354_v17, 7  ;;  %s2663_s8 = smov 112   ;;  %s2664_s11 = smov 96  }
  0xba   : > { %2124 = vmatprep.subr.bf16.mxu0 %v2659_v0  ;;  %2138 = vmatprep.mubr.msk.bf16.mxu0 %vm2660_vm0, %v2659_v0  ;;  %v2358_v10 = vld [vmem:[#allocation7 + $0x38] sm:$0xff]   ;;  %v2665_v42 = vmov 1983009808   ;;  %v2666_v46 = vmov 1934713408   ;;  %s2669_s17 = smov 64  }
  0xbb   : > { %2144 = vmatprep.mubr.msk.bf16.mxu1 %vm2660_vm0, %v2659_v0  ;;  %v356_v20 = vsub.s32 0, %v2982_v19  ;;  %v2985_v21 = vld [vmem:[#allocation5] sm:$0xff]  ;;  %v361_v22 = vsub.s32 1, %v2982_v19  ;;  %v383_v31 = vsub.s32 7, %v2982_v19  ;;  %v482_v43 = vunpack.c.l.s4 %v2665_v42  ;;  %s2670_s30 = smov 16   ;;  %s2671_s25 = smov 8  }
  0xbc   : > { %v499_v47 = vunpack.c.l.s4 %v2666_v46  ;;  %vm1232_vm3 = vcmask 1043456   ;;  %s2672_s16 = smov 24   ;;  %vm1563_vm4 = vcmask 130048   ;;  %vm1565_vm5 = vcmask 195584   ;;  %s2073_s29 = sshll.u32 %s2730_s27, 7 }
  0xbd   : > { %344 = vadd.xlane.f32.xlu0 %v343_v2  ;;  %2125 = vmatpush3.bf16.msra.mxu0 %v2352_v4  ;;  %v357_v24 = vrot.slane %v2985_v21, %v356_v20  ;;  %v362_v27 = vrot.slane %v2985_v21, %v361_v22  ;;  %v384_v32 = vrot.slane %v2985_v21, %v383_v31  ;;  %v483_v44 = vunpack.c.0.s8 %v482_v43  ;;  %s337_s10 = scalar_lea.vmem [#allocation13], %s2028_s12  ;;  %s1886_s27 = scalar_lea.sflag [#allocation4], %s2942_s7 }
  0xbe   : > { %2126 = vmatprep.subr.bf16.mxu0 %v2659_v0  ;;  %v500_v50 = vunpack.c.0.s8 %v499_v47  ;;  %v2667_v4 = vmov 0   ;;  %vm1588_vm6 = vcmask 261120   ;;  %s1899_s9 = sshll.u32 %s337_s10, 4  ;;  %p3296_p13 = scmp.ne.s32.totalorder %s3286_s14, 0  ;;  %s3229_s9 = int_to_ptr.vmem [resolvable:$true] %s1899_s9 }
  0xbf   : > { %v3010_v45 = vsub.s32 %v483_v44, %v2982_v19  ;;  %s2571_s12 = scalar_lea.vmem %s3229_s9, 128 }
  0xc0   : > { %v3021_v57 = vsub.s32 %v500_v50, %v2982_v19  ;;  %p2572_p11 = scmp.ne.s32.totalorder %s3229_s9, %s2571_s12 }
  0xc1   : > { %2127 = vmatpush3.bf16.msra.mxu0 %v2353_v5 }
  0xc2   : > { %2128 = vmatprep.subr.bf16.mxu0 %v2659_v0  ;;  %p2573_p5 = pnand %p2572_p11, %p3296_p13 }
  0xc4   : > { %p2574_p7 = pneg %p2573_p5 }
  0xc5   : > { %2129 = vmatpush3.bf16.msra.mxu0 %v2354_v6 }
  0xc6   : > { %2130 = vmatprep.subr.bf16.mxu0 %v2659_v0 }
  0xc9   : > { %2131 = vmatpush3.bf16.msra.mxu0 %v2355_v7 }
  0xca   : > { %2132 = vmatprep.subr.bf16.mxu0 %v2659_v0 }
  0xcd   : > { %2133 = vmatpush3.bf16.msra.mxu0 %v2356_v8 }
  0xce   : > { %2134 = vmatprep.subr.bf16.mxu0 %v2659_v0 }
  0xd1   : > { %2135 = vmatpush3.bf16.msra.mxu0 %v2357_v9 }
  0xd2   : > { %2136 = vmatprep.subr.bf16.mxu0 %v2659_v0 }
  0xd5   : > { %2137 = vmatpush3.bf16.msra.mxu0 %v2358_v10 }
  0xd6   : > { %2166 = vmatprep.subr.bf16.mxu0 %v2659_v0 }
 0x146   : > { %v342_v11 = vpop.xlane.xlu0 %341 }
 0x147   : > { %v346_v12 = vmul.f32 0.03125, %v342_v11 }
 0x149   : > { %v348_v14 = vmul.f32 %v346_v12, %v346_v12  ;;  %v350_v23 = vsub.f32 %v339_v1, %v346_v12 }
 0x14a   : > { %v345_v13 = vpop.xlane.xlu0 %344 }
 0x14b   : > { %v347_v15 = vmul.f32 0.03125, %v345_v13 }
 0x14d   : > { %v349_v16 = vsub.f32 %v347_v15, %v348_v14 }
 0x14f   : > { %v351_v18 = vadd.f32 1e-05, %v349_v16 }
 0x151   : > { %2377 = vrsqrt.f32 %v351_v18 }
 0x15b   : > { %v2378_v25 = vpop.eup %2377 }
 0x15c   : > { %v353_v26 = vmul.f32 %v2378_v25, %v350_v23 }
 0x15e   : > { %v358_v28 = vmul.f32 %v357_v24, %v353_v26 }
 0x160   : > { %v363_v29 = vadd.f32 %v362_v27, %v358_v28 }
 0x162   : > { %v364_v30 = vpack.c.bf16 %v363_v29, %v363_v29 }
 0x164   : > { %2139 = vmatmul.mubr.bf16.vlgmr.msra.gmra.mrb[0].mxu0 %v364_v30 }
 0x165   : > { %2168 = vmatprep.mubr.msk.bf16.mxu0 %vm2660_vm0, %v2659_v0 }
 0x237   : > { %v467_v33 = vpop.f32.mrb[0].mxu0 }
 0x238   : > { %v468_v34 = vadd.f32 %v467_v33, %v384_v32  ;;  %v2140_v35 = vpop.f32.mrb[1].mxu0 }
 0x239   : > { %v470_v36 = vpop.f32.mrb[2].mxu0 }
 0x23a   : > { %v2994_v37 = vpack.c.bf16 %v468_v34, %v468_v34  ;;  %v2141_v38 = vpop.f32.mrb[3].mxu0 }
 0x23c   : > { %479 = vrot.lane.b32.xlu0 %v2994_v37, %s2661_s28  ;;  %475 = vrot.lane.b32.xlu1 %v2994_v37, %s2662_s26  ;;  %v487_v53 = vrot.slane %v2994_v37, %v3010_v45  ;;  %s3227_s28 = scalar_lea.hbm %s3277_s6, %s2073_s29  ;;  %s2673_s26 = smov [#allocation13]  }
 0x240   : > { %477 = vrot.lane.b32.xlu1 %v2994_v37, %s2663_s8  ;;  %s2575_s8 = sshll.u32 %s2673_s26, 4  ;;  %s2576_s8 = int_to_ptr.vmem [resolvable:$false] %s2575_s8 }
 0x241   : > { %p2578_p4 = scmp.lt.s32.totalorder %s3229_s9, %s2576_s8 }
 0x244   : > { %642 = vrot.lane.b32.xlu1 %v2994_v37, %s2664_s11 }
 0x2ae   : > { %v3000_v39 = vpop.permute.xlu1 %475  ;;  %v3006_v41 = vpop.permute.xlu0 %479 }
 0x2af   : > { %644 = vrot.lane.b32.xlu1 %v3000_v39, %s2664_s11  ;;  %v529_v51 = vrot.slane %v3006_v41, %v3010_v45  ;;  %v521_v52 = vrot.slane %v3000_v39, %v3010_v45 }
 0x2b1   : > { %v530_v58 = vcombine.low %v521_v52, %v529_v51  ;;  %v531_v59 = vcombine.high %v521_v52, %v529_v51 }
 0x2b2   : > { %v3003_v40 = vpop.permute.xlu1 %477 }
 0x2b3   : > { %646 = vrot.lane.b32.xlu1 %v3003_v40, %s2664_s11  ;;  %v495_v48 = vrot.slane %v3003_v40, %v3010_v45  ;;  %v3030_v63 = vrot.slane %v530_v58, %v3021_v57  ;;  %v3033_v1 = vrot.slane %v531_v59, %v3021_v57 }
 0x2b5   : > { %v496_v54 = vcombine.low %v487_v53, %v495_v48  ;;  %v497_v55 = vcombine.high %v487_v53, %v495_v48  ;;  %v546_v10 = vcombine.high %v3030_v63, %v2667_v4  ;;  %v547_v11 = vcombine.high %v3033_v1, %v2667_v4 }
 0x2b6   : > { %v643_v49 = vpop.permute.xlu1 %642  ;;  %v553_v20 = vshrl.u32 %v3030_v63, 16  ;;  %v569_v25 = vshrl.u32 %v3033_v1, 16 }
 0x2b7   : > { %648 = vrot.lane.b32.xlu1 %v3006_v41, %s2664_s11  ;;  %v3024_v60 = vrot.slane %v496_v54, %v3021_v57  ;;  %v3027_v61 = vrot.slane %v497_v55, %v3021_v57  ;;  %v657_v2 = vrot.slane %v643_v49, %v3010_v45  ;;  %v561_v24 = vshrl.u32 %v546_v10, 16  ;;  %s2577_s11 = scalar_lea.vmem %s2576_s8, 256 }
 0x2b8   : > { %v577_v26 = vshrl.u32 %v547_v11, 16  ;;  %p2579_p1 = scmp.lt.s32.totalorder %s2577_s11, %s2571_s12 }
 0x2b9   : > { %v512_v5 = vcombine.high %v3024_v60, %v2667_v4  ;;  %v513_v6 = vcombine.high %v3027_v61, %v2667_v4  ;;  %v552_v28 = vshrl.u32 %v3024_v60, 16  ;;  %v568_v29 = vshrl.u32 %v3027_v61, 16 }
 0x2ba   : > { %p2580_p3 = por %p2579_p1, %p2578_p4 }
 0x2bb   : > { %v560_v15 = vshrl.u32 %v512_v5, 16  ;;  %v576_v16 = vshrl.u32 %v513_v6, 16  ;;  %v558_v58 = vpack.i.b16 %v546_v10, %v512_v5  ;;  %v574_v59 = vpack.i.b16 %v547_v11, %v513_v6 }
 0x2bc   : > { %p2581_p9 = pnand %p2580_p3, %p2574_p7 }
 0x2bd   : > { %v562_v32 = vpack.i.b16 %v561_v24, %v560_v15  ;;  %v578_v33 = vpack.i.b16 %v577_v26, %v576_v16  ;;  %v588_v5 = vcombine.low %v558_v58, %v574_v59 }
 0x321   : > { %v645_v56 = vpop.permute.xlu1 %644 }
 0x322   : > { %v691_v14 = vrot.slane %v645_v56, %v3010_v45 }
 0x325   : > { %v647_v62 = vpop.permute.xlu1 %646 }
 0x326   : > { %v665_v3 = vrot.slane %v647_v62, %v3010_v45 }
 0x328   : > { %v666_v7 = vcombine.low %v657_v2, %v665_v3  ;;  %v667_v8 = vcombine.high %v657_v2, %v665_v3  ;;  %v554_v3 = vpack.i.b16 %v553_v20, %v552_v28 }
 0x329   : > { %v649_v9 = vpop.permute.xlu1 %648 }
 0x32a   : > { %v674_v12 = vrot.slane %v666_v7, %v3021_v57  ;;  %v699_v13 = vrot.slane %v649_v9, %v3010_v45  ;;  %v681_v18 = vrot.slane %v667_v8, %v3021_v57  ;;  %v570_v7 = vpack.i.b16 %v569_v25, %v568_v29 }
 0x32c   : > { %v700_v22 = vcombine.low %v691_v14, %v699_v13  ;;  %v701_v23 = vcombine.high %v691_v14, %v699_v13  ;;  %v682_v27 = vcombine.high %v674_v12, %v2667_v4  ;;  %v683_v34 = vcombine.high %v681_v18, %v2667_v4 }
 0x32d   : > { %v722_v35 = vshrl.u32 %v674_v12, 16  ;;  %v738_v46 = vshrl.u32 %v681_v18, 16  ;;  %v566_v14 = vpack.i.b16 %v3033_v1, %v3027_v61  ;;  %v605_v6 = vcombine.low %v554_v3, %v570_v7 }
 0x32e   : > { %v708_v30 = vrot.slane %v700_v22, %v3021_v57  ;;  %v715_v31 = vrot.slane %v701_v23, %v3021_v57  ;;  %v730_v44 = vshrl.u32 %v682_v27, 16  ;;  %v746_v53 = vshrl.u32 %v683_v34, 16 }
 0x32f   : > { %v595_v61 = vrot.slane %v588_v5, %v3010_v45  ;;  %v612_v1 = vrot.slane %v605_v6, %v3010_v45  ;;  %v2668_v3 = vmov -1e+30  }
 0x330   : > { %v716_v36 = vcombine.high %v708_v30, %v2667_v4  ;;  %v717_v38 = vcombine.high %v715_v31, %v2667_v4  ;;  %v720_v42 = vpack.i.b16 %v708_v30, %v674_v12  ;;  %v723_v43 = vshrl.u32 %v708_v30, 16 }
 0x331   : > { %v736_v47 = vpack.i.b16 %v715_v31, %v681_v18  ;;  %v739_v48 = vshrl.u32 %v715_v31, 16  ;;  %v550_v12 = vpack.i.b16 %v3030_v63, %v3024_v60  ;;  %v613_v18 = vcombine.low %v562_v32, %v578_v33 }
 0x332   : > { %v724_v49 = vpack.i.b16 %v723_v43, %v722_v35  ;;  %v728_v50 = vpack.i.b16 %v716_v36, %v682_v27  ;;  %v731_v51 = vshrl.u32 %v716_v36, 16  ;;  %v744_v52 = vpack.i.b16 %v717_v38, %v683_v34 }
 0x333   : > { %v740_v54 = vpack.i.b16 %v739_v48, %v738_v46  ;;  %v747_v55 = vshrl.u32 %v717_v38, 16  ;;  %v750_v56 = vcombine.low %v720_v42, %v736_v47  ;;  %v580_v22 = vcombine.low %v550_v12, %v566_v14 }
 0x334   : > { %v732_v62 = vpack.i.b16 %v731_v51, %v730_v44  ;;  %v758_v2 = vcombine.low %v728_v50, %v744_v52  ;;  %v620_v60 = vrot.slane %v613_v18, %v3010_v45 }
 0x335   : > { %v748_v8 = vpack.i.b16 %v747_v55, %v746_v53  ;;  %v775_v9 = vcombine.low %v724_v49, %v740_v54  ;;  %v757_v15 = vrot.slane %v750_v56, %v3010_v45  ;;  %v587_v26 = vrot.slane %v580_v22, %v3010_v45 }
 0x336   : > { %v765_v13 = vrot.slane %v758_v2, %v3010_v45  ;;  %v621_v27 = vcombine.low %v612_v1, %v620_v60 }
 0x337   : > { %v783_v16 = vcombine.low %v732_v62, %v748_v8  ;;  %v782_v11 = vrot.slane %v775_v9, %v3010_v45  ;;  %v596_v29 = vcombine.low %v587_v26, %v595_v61  ;;  %v985_v62 = vand.u32 127, %v354_v17 }
 0x338   : > { %v766_v10 = vcombine.low %v757_v15, %v765_v13  ;;  %v628_v31 = vrot.slane %v621_v27, %v3021_v57 }
 0x339   : > { %v790_v20 = vrot.slane %v783_v16, %v3010_v45  ;;  %v603_v33 = vrot.slane %v596_v29, %v3021_v57  ;;  %vm986_vm2 = vcmp.le.s32.totalorder %v985_v62, %v2982_v19 }
 0x33a   : > { %v773_v63 = vrot.slane %v766_v10, %v3021_v57  ;;  %v634_v42 = vshrl.u32 %v628_v31, 16  ;;  %v629_v50 = vcombine.high %v628_v31, %v2667_v4  ;;  %v987_v7 = vsel %vm986_vm2, 0.0, %v2668_v3 }
 0x33b   : > { %v791_v23 = vcombine.low %v782_v11, %v790_v20  ;;  %v632_v35 = vpack.i.b16 %v628_v31, %v603_v33  ;;  %v633_v44 = vshrl.u32 %v603_v33, 16  ;;  %v604_v52 = vcombine.high %v603_v33, %v2667_v4 }
 0x33c   : > { %v803_v32 = vshrl.u32 %v773_v63, 16  ;;  %v774_v43 = vcombine.high %v773_v63, %v2667_v4  ;;  %v640_v56 = vshrl.u32 %v629_v50, 16 }
 0x33d   : > { %v798_v24 = vrot.slane %v791_v23, %v3021_v57  ;;  %v635_v47 = vpack.i.b16 %v634_v42, %v633_v44  ;;  %v638_v54 = vpack.i.b16 %v629_v50, %v604_v52  ;;  %v639_v58 = vshrl.u32 %v604_v52, 16 }
 0x33e   : > { %v809_v51 = vshrl.u32 %v774_v43, 16 }
 0x33f   : > { %v802_v25 = vpack.i.b16 %v798_v24, %v773_v63  ;;  %v804_v30 = vshrl.u32 %v798_v24, 16  ;;  %v799_v38 = vcombine.high %v798_v24, %v2667_v4  ;;  %v641_v59 = vpack.i.b16 %v640_v56, %v639_v58 }
 0x341   : > { %v993_v28 = vsel %vm988_vm1, %v802_v25, 0  ;;  %v805_v34 = vpack.i.b16 %v804_v30, %v803_v32  ;;  %v808_v46 = vpack.i.b16 %v799_v38, %v774_v43  ;;  %v810_v49 = vshrl.u32 %v799_v38, 16 }
 0x342   : > { %2143 = vmatpush3.bf16.xpose.msra.mxu1 %v993_v28 }
 0x343   : > { %2148 = vmatprep.subr.bf16.mxu1 %v2659_v0  ;;  %v1039_v36 = vsel %vm988_vm1, %v805_v34, 0  ;;  %v1085_v48 = vsel %vm988_vm1, %v808_v46, 0  ;;  %v811_v53 = vpack.i.b16 %v810_v49, %v809_v51 }
 0x345   : > { %v1131_v55 = vsel %vm988_vm1, %v811_v53, 0 }
 0x349   : > { %2145 = vmatmul.mubr.msk.bf16.vlgmr.msra.gmra.mrb[0].mxu1 %vm988_vm1, %v632_v35 }
 0x34a   : > { %2149 = vmatpush3.bf16.xpose.msra.mxu1 %v1039_v36  ;;  %2150 = vmatprep.mubr.msk.bf16.mxu1 %vm2660_vm0, %v2659_v0 }
 0x34b   : > { %2154 = vmatprep.subr.bf16.mxu1 %v2659_v0 }
 0x351   : > { %2151 = vmatmul.mubr.msk.bf16.vlgmr.msra.gmra.mrb[4].mxu1 %vm988_vm1, %v635_v47 }
 0x352   : > { %2155 = vmatpush3.bf16.xpose.msra.mxu1 %v1085_v48  ;;  %2156 = vmatprep.mubr.msk.bf16.mxu1 %vm2660_vm0, %v2659_v0 }
 0x353   : > { %2160 = vmatprep.subr.bf16.mxu1 %v2659_v0 }
 0x359   : > { %2157 = vmatmul.mubr.msk.bf16.vlgmr.msra.gmra.mrb[8].mxu1 %vm988_vm1, %v638_v54 }
 0x35a   : > { %2161 = vmatpush3.bf16.xpose.msra.mxu1 %v1131_v55  ;;  %2162 = vmatprep.mubr.msk.bf16.mxu1 %vm2660_vm0, %v2659_v0 }
 0x35b   : > { %2172 = vmatprep.subr.bf16.mxu1 %v2659_v0 }
 0x361   : > { %2163 = vmatmul.mubr.msk.bf16.vlgmr.msra.gmra.mrb[12].mxu1 %vm988_vm1, %v641_v59 }
 0x362   : > { %2174 = vmatprep.mubr.msk.bf16.mxu1 %vm2660_vm0, %v2659_v0 }
 0x41c   : > { %v1029_v2 = vpop.f32.mrb[0].mxu1 }
 0x41d   : > { %v1173_v8 = vmul.f32 0.35355338, %v1029_v2  ;;  %v2146_v9 = vpop.f32.mrb[1].mxu1 }
 0x41e   : > { %v1032_v12 = vpop.f32.mrb[2].mxu1 }
 0x41f   : > { %v2147_v13 = vpop.f32.mrb[3].mxu1  ;;  %v1177_v14 = vadd.f32 %v1173_v8, %v987_v7 }
 0x421   : > { %v1181_v15 = vsel %vm988_vm1, %v1177_v14, -inf }
 0x422   : > { %1182 = vmax.xlane.f32.xlu1 %v1181_v15 }
 0x424   : > { %v1075_v16 = vpop.f32.mrb[4].mxu1 }
 0x425   : > { %v1174_v18 = vmul.f32 0.35355338, %v1075_v16  ;;  %v2152_v5 = vpop.f32.mrb[5].mxu1 }
 0x426   : > { %v1078_v6 = vpop.f32.mrb[6].mxu1 }
 0x427   : > { %v2153_v10 = vpop.f32.mrb[7].mxu1  ;;  %v1178_v11 = vadd.f32 %v1174_v18, %v987_v7 }
 0x429   : > { %v1184_v17 = vsel %vm988_vm1, %v1178_v11, -inf }
 0x42a   : > { %1185 = vmax.xlane.f32.xlu0 %v1184_v17 }
 0x42c   : > { %v1121_v20 = vpop.f32.mrb[8].mxu1 }
 0x42d   : > { %v1175_v22 = vmul.f32 0.35355338, %v1121_v20  ;;  %v2158_v23 = vpop.f32.mrb[9].mxu1 }
 0x42e   : > { %v1124_v60 = vpop.f32.mrb[10].mxu1 }
 0x42f   : > { %v2159_v63 = vpop.f32.mrb[11].mxu1  ;;  %v1179_v24 = vadd.f32 %v1175_v22, %v987_v7 }
 0x431   : > { %v1187_v61 = vsel %vm988_vm1, %v1179_v24, -inf }
 0x432   : > { %1188 = vmax.xlane.f32.xlu1 %v1187_v61 }
 0x434   : > { %v1167_v1 = vpop.f32.mrb[12].mxu1 }
 0x435   : > { %v1176_v25 = vmul.f32 0.35355338, %v1167_v1  ;;  %v2164_v26 = vpop.f32.mrb[13].mxu1 }
 0x436   : > { %v1170_v27 = vpop.f32.mrb[14].mxu1 }
 0x437   : > { %v2165_v28 = vpop.f32.mrb[15].mxu1  ;;  %v1180_v29 = vadd.f32 %v1176_v25, %v987_v7 }
 0x439   : > { %v1190_v30 = vsel %vm988_vm1, %v1180_v29, -inf }
 0x43a   : > { %1191 = vmax.xlane.f32.xlu0 %v1190_v30 }
 0x443   : > { %812 = vrot.lane.b32.xlu1 %v2994_v37, %s2669_s17 }
 0x4af   : > { %v1183_v31 = vpop.xlane.xlu1 %1182 }
 0x4b0   : > { %v1193_v32 = vsub.f32 %v1177_v14, %v1183_v31 }
 0x4b2   : > { %v1197_v33 = vmul.f32 1.442695, %v1193_v32 }
 0x4b4   : > { %2379 = vpow2.f32 %v1197_v33 }
 0x4b7   : > { %v1186_v34 = vpop.xlane.xlu0 %1185 }
 0x4b8   : > { %v1194_v35 = vsub.f32 %v1178_v11, %v1186_v34 }
 0x4ba   : > { %v1199_v36 = vmul.f32 1.442695, %v1194_v35 }
 0x4bc   : > { %2381 = vpow2.f32 %v1199_v36 }
 0x4be   : > { %v3106_v38 = vpop.eup %2379 }
 0x4bf   : > { %v1205_v42 = vsel %vm988_vm1, %v3106_v38, 0.0  ;;  %v1189_v47 = vpop.xlane.xlu1 %1188 }
 0x4c0   : > { %1206 = vadd.xlane.f32.xlu1 %v1205_v42  ;;  %v1195_v48 = vsub.f32 %v1179_v24, %v1189_v47 }
 0x4c2   : > { %v1201_v50 = vmul.f32 1.442695, %v1195_v48 }
 0x4c6   : > { %v3110_v43 = vpop.eup %2381 }
 0x4c7   : > { %v1208_v44 = vsel %vm988_vm1, %v3110_v43, 0.0  ;;  %v1192_v37 = vpop.xlane.xlu0 %1191 }
 0x4c8   : > { %1209 = vadd.xlane.f32.xlu0 %v1208_v44  ;;  %v1196_v46 = vsub.f32 %v1180_v29, %v1192_v37 }
 0x4ca   : > { %v1203_v49 = vmul.f32 1.442695, %v1196_v46 }
 0x4cc   : > { %2383 = vpow2.f32 %v1203_v49 }
 0x4cd   : > { %2385 = vpow2.f32 %v1201_v50 }
 0x4d1   : > { %816 = vrot.lane.b32.xlu1 %v3003_v40, %s2669_s17 }
 0x4d5   : > { %818 = vrot.lane.b32.xlu1 %v3006_v41, %s2669_s17 }
 0x4d6   : > { %v3117_v51 = vpop.eup %2383 }
 0x4d7   : > { %v1214_v52 = vsel %vm988_vm1, %v3117_v51, 0.0  ;;  %v3121_v53 = vpop.eup %2385 }
 0x4d8   : > { %v1211_v40 = vsel %vm988_vm1, %v3121_v53, 0.0 }
 0x4de   : > { %814 = vrot.lane.b32.xlu0 %v3000_v39, %s2669_s17  ;;  %v813_v39 = vpop.permute.xlu1 %812 }
 0x4df   : > { %v827_v56 = vrot.slane %v813_v39, %v3010_v45 }
 0x4f9   : > { %1215 = vadd.xlane.f32.xlu1 %v1214_v52 }
 0x4fd   : > { %1212 = vadd.xlane.f32.xlu0 %v1211_v40 }
 0x54d   : > { %v1207_v41 = vpop.xlane.xlu1 %1206 }
 0x54e   : > { %2387 = vrcp.f32 %v1207_v41 }
 0x551   : > { %v817_v54 = vpop.permute.xlu1 %816 }
 0x552   : > { %v835_v55 = vrot.slane %v817_v54, %v3010_v45 }
 0x554   : > { %v836_v58 = vcombine.low %v827_v56, %v835_v55  ;;  %v837_v62 = vcombine.high %v827_v56, %v835_v55 }
 0x555   : > { %v1210_v59 = vpop.xlane.xlu0 %1209  ;;  %v819_v2 = vpop.permute.xlu1 %818 }
 0x556   : > { %v844_v3 = vrot.slane %v836_v58, %v3021_v57  ;;  %v869_v8 = vrot.slane %v819_v2, %v3010_v45  ;;  %v851_v12 = vrot.slane %v837_v62, %v3021_v57  ;;  %2389 = vrcp.f32 %v1210_v59 }
 0x558   : > { %v852_v15 = vcombine.high %v844_v3, %v2667_v4  ;;  %v853_v5 = vcombine.high %v851_v12, %v2667_v4  ;;  %v892_v6 = vshrl.u32 %v844_v3, 16  ;;  %v908_v23 = vshrl.u32 %v851_v12, 16  ;;  %v2388_v42 = vpop.eup %2387 }
 0x559   : > { %v815_v7 = vpop.permute.xlu0 %814  ;;  %v1218_v40 = vmul.f32 %v2388_v42, %v3106_v38 }
 0x55a   : > { %v861_v9 = vrot.slane %v815_v7, %v3010_v45  ;;  %v900_v22 = vshrl.u32 %v852_v15, 16  ;;  %v916_v26 = vshrl.u32 %v853_v5, 16 }
 0x55c   : > { %v870_v13 = vcombine.low %v861_v9, %v869_v8  ;;  %v871_v14 = vcombine.high %v861_v9, %v869_v8  ;;  %v1225_v8 = vpack.c.bf16 %v1218_v40, %v1218_v40 }
 0x55e   : > { %v878_v16 = vrot.slane %v870_v13, %v3021_v57  ;;  %v885_v18 = vrot.slane %v871_v14, %v3021_v57 }
 0x560   : > { %v886_v10 = vcombine.high %v878_v16, %v2667_v4  ;;  %v887_v11 = vcombine.high %v885_v18, %v2667_v4  ;;  %v890_v17 = vpack.i.b16 %v878_v16, %v844_v3  ;;  %v893_v20 = vshrl.u32 %v878_v16, 16  ;;  %v2390_v37 = vpop.eup %2389 }
 0x561   : > { %v906_v60 = vpack.i.b16 %v885_v18, %v851_v12  ;;  %v909_v63 = vshrl.u32 %v885_v18, 16  ;;  %v1220_v56 = vmul.f32 %v2390_v37, %v3110_v43 }
 0x562   : > { %v894_v24 = vpack.i.b16 %v893_v20, %v892_v6  ;;  %v898_v61 = vpack.i.b16 %v886_v10, %v852_v15  ;;  %v901_v1 = vshrl.u32 %v886_v10, 16  ;;  %v914_v25 = vpack.i.b16 %v887_v11, %v853_v5 }
 0x563   : > { %v910_v27 = vpack.i.b16 %v909_v63, %v908_v23  ;;  %v917_v28 = vshrl.u32 %v887_v11, 16  ;;  %v920_v29 = vcombine.low %v890_v17, %v906_v60  ;;  %v1226_v9 = vpack.c.bf16 %v1220_v56, %v1220_v56 }
 0x564   : > { %v902_v30 = vpack.i.b16 %v901_v1, %v900_v22  ;;  %v928_v31 = vcombine.low %v898_v61, %v914_v25 }
 0x565   : > { %v918_v32 = vpack.i.b16 %v917_v28, %v916_v26  ;;  %v945_v33 = vcombine.low %v894_v24, %v910_v27  ;;  %v927_v34 = vrot.slane %v920_v29, %v3010_v45 }
 0x566   : > { %v935_v35 = vrot.slane %v928_v31, %v3010_v45 }
 0x567   : > { %v953_v36 = vcombine.low %v902_v30, %v918_v32  ;;  %v952_v46 = vrot.slane %v945_v33, %v3010_v45 }
 0x568   : > { %v936_v44 = vcombine.low %v927_v34, %v935_v35 }
 0x569   : > { %v960_v47 = vrot.slane %v953_v36, %v3010_v45 }
 0x56a   : > { %v943_v48 = vrot.slane %v936_v44, %v3021_v57 }
 0x56b   : > { %v961_v49 = vcombine.low %v952_v46, %v960_v47  ;;  %v2359_v46 = vld [vmem:[#allocation8] sm:$0xff]  }
 0x56c   : > { %v944_v50 = vcombine.high %v943_v48, %v2667_v4  ;;  %v973_v41 = vshrl.u32 %v943_v48, 16 }
 0x56d   : > { %v968_v52 = vrot.slane %v961_v49, %v3021_v57 }
 0x56e   : > { %v979_v58 = vshrl.u32 %v944_v50, 16 }
 0x56f   : > { %v972_v39 = vpack.i.b16 %v968_v52, %v943_v48  ;;  %v974_v54 = vshrl.u32 %v968_v52, 16  ;;  %v969_v55 = vcombine.high %v968_v52, %v2667_v4 }
 0x571   : > { %v1234_v59 = vsel %vm1232_vm3, %v972_v39, 0  ;;  %v975_v62 = vpack.i.b16 %v974_v54, %v973_v41  ;;  %v978_v2 = vpack.i.b16 %v969_v55, %v944_v50  ;;  %v980_v3 = vshrl.u32 %v969_v55, 16  ;;  %v2360_v54 = vld [vmem:[#allocation8 + $0x8] sm:$0xff]  }
 0x572   : > { %2167 = vmatpush3.bf16.msra.mxu0 %v1234_v59 }
 0x573   : > { %v1280_v7 = vsel %vm1232_vm3, %v975_v62, 0  ;;  %2178 = vmatprep.subr.bf16.mxu0 %v2659_v0  ;;  %v981_v38 = vpack.i.b16 %v980_v3, %v979_v58  ;;  %v1326_v4 = vsel %vm1232_vm3, %v978_v2, 0 }
 0x574   : > { %2173 = vmatpush3.bf16.msra.mxu1 %v1280_v7 }
 0x575   : > { %2169 = vmatmul.mubr.msk.bf16.vlgmr.msra.gmra.mrb[4].mxu0 %vm988_vm1, %v1225_v8  ;;  %2184 = vmatprep.subr.bf16.mxu1 %v2659_v0  ;;  %v1372_v43 = vsel %vm1232_vm3, %v981_v38, 0 }
 0x576   : > { %2179 = vmatpush3.bf16.msra.mxu0 %v1326_v4  ;;  %2180 = vmatprep.mubr.msk.bf16.mxu0 %vm2660_vm0, %v2659_v0 }
 0x577   : > { %2175 = vmatmul.mubr.msk.bf16.vlgmr.msra.gmra.mrb[16].mxu1 %vm988_vm1, %v1226_v9  ;;  %2190 = vmatprep.subr.bf16.mxu0 %v2659_v0 }
 0x578   : > { %2185 = vmatpush3.bf16.msra.mxu1 %v1372_v43  ;;  %2186 = vmatprep.mubr.msk.bf16.mxu1 %vm2660_vm0, %v2659_v0 }
 0x579   : > { %2198 = vmatprep.subr.bf16.mxu1 %v2659_v0 }
 0x586   : > { %v1216_v12 = vpop.xlane.xlu1 %1215 }
 0x587   : > { %2391 = vrcp.f32 %v1216_v12 }
 0x58a   : > { %v1213_v13 = vpop.xlane.xlu0 %1212 }
 0x58b   : > { %2393 = vrcp.f32 %v1213_v13 }
 0x591   : > { %v2392_v14 = vpop.eup %2391 }
 0x592   : > { %v1224_v15 = vmul.f32 %v2392_v14, %v3117_v51 }
 0x594   : > { %v1228_v16 = vpack.c.bf16 %v1224_v15, %v1224_v15 }
 0x595   : > { %v2394_v18 = vpop.eup %2393 }
 0x596   : > { %v1222_v5 = vmul.f32 %v2394_v18, %v3121_v53  ;;  %2187 = vmatmul.mubr.msk.bf16.vlgmr.msra.gmra.mrb[20].mxu1 %vm988_vm1, %v1228_v16 }
 0x597   : > { %2214 = vmatprep.mubr.msk.bf16.mxu1 %vm2660_vm0, %v2659_v0 }
 0x598   : > { %v1227_v6 = vpack.c.bf16 %v1222_v5, %v1222_v5 }
 0x59a   : > { %2181 = vmatmul.mubr.msk.bf16.vlgmr.msra.gmra.mrb[8].mxu0 %vm988_vm1, %v1227_v6 }
 0x59b   : > { %2194 = vmatprep.mubr.msk.bf16.mxu0 %vm2660_vm0, %v2659_v0  ;;  %2191 = vmatpush3.bf16.msra.mxu0 %v2359_v46 }
 0x59c   : > { %2192 = vmatprep.subr.bf16.mxu0 %v2659_v0 }
 0x59f   : > { %2193 = vmatpush3.bf16.msra.mxu0 %v2360_v54  ;;  %v2371_v54 = vld [vmem:[#allocation11 + $0x10] sm:$0xff]  }
 0x5a0   : > { %2218 = vmatprep.subr.bf16.mxu0 %v2659_v0 }
 0x648   : > { %v1270_v10 = vpop.f32.mrb[4].mxu0 }
 0x649   : > { %v2170_v11 = vpop.f32.mrb[5].mxu0 }
 0x64a   : > { %v1273_v17 = vpop.f32.mrb[6].mxu0  ;;  %v1316_v20 = vpop.f32.mrb[16].mxu1  ;;  %v1574_v11 = vsub.s32 2, %v2982_v19 }
 0x64b   : > { %v2171_v51 = vpop.f32.mrb[7].mxu0  ;;  %v2176_v22 = vpop.f32.mrb[17].mxu1 }
 0x64c   : > { %v1319_v23 = vpop.f32.mrb[18].mxu1  ;;  %v1575_v17 = vrot.slane %v2985_v21, %v1574_v11 }
 0x64d   : > { %v2177_v60 = vpop.f32.mrb[19].mxu1 }
 0x64e   : > { %v2399_v60 = vld [vmem:[%s2948_s20] sm:$0xff] }
 0x669   : > { %v1408_v53 = vpop.f32.mrb[20].mxu1 }
 0x66a   : > { %v1430_v63 = vcombine.low %v1316_v20, %v1408_v53  ;;  %v1431_v24 = vcombine.high %v1316_v20, %v1408_v53  ;;  %v2188_v61 = vpop.f32.mrb[21].mxu1 }
 0x66b   : > { %v1411_v1 = vpop.f32.mrb[22].mxu1  ;;  %v2362_v61 = vld [vmem:[#allocation10 + $0x8] sm:$0xff]  }
 0x66c   : > { %v2189_v25 = vpop.f32.mrb[23].mxu1  ;;  %v1438_v31 = vrot.slane %v1430_v63, %v3010_v45  ;;  %v1445_v32 = vrot.slane %v1431_v24, %v3010_v45  ;;  %v2363_v1 = vld [vmem:[#allocation10 + $0x10] sm:$0xff]  }
 0x66d   : > { %v1362_v26 = vpop.f32.mrb[8].mxu0  ;;  %v2364_v25 = vld [vmem:[#allocation10 + $0x18] sm:$0xff]  }
 0x66e   : > { %v1414_v27 = vcombine.low %v1270_v10, %v1362_v26  ;;  %v1415_v28 = vcombine.high %v1270_v10, %v1362_v26  ;;  %v2182_v29 = vpop.f32.mrb[9].mxu0  ;;  %v2361_v10 = vld [vmem:[#allocation10] sm:$0xff]  }
 0x66f   : > { %v1365_v30 = vpop.f32.mrb[10].mxu0  ;;  %2199 = vmatpush3.bf16.msra.mxu1 %v2361_v10  ;;  %v2365_v26 = vld [vmem:[#allocation10 + $0x20] sm:$0xff]   ;;  %v2368_v29 = vld [vmem:[#allocation10 + $0x38] sm:$0xff]  }
 0x670   : > { %v1422_v33 = vrot.slane %v1414_v27, %v3010_v45  ;;  %v1429_v34 = vrot.slane %v1415_v28, %v3010_v45  ;;  %v2183_v35 = vpop.f32.mrb[11].mxu0  ;;  %2200 = vmatprep.subr.bf16.mxu1 %v2659_v0  ;;  %v2366_v27 = vld [vmem:[#allocation10 + $0x28] sm:$0xff]   ;;  %v2367_v28 = vld [vmem:[#allocation10 + $0x30] sm:$0xff]  }
 0x672   : > { %v1446_v36 = vcombine.low %v1422_v33, %v1438_v31  ;;  %v1447_v42 = vcombine.high %v1422_v33, %v1438_v31  ;;  %v1462_v44 = vcombine.low %v1429_v34, %v1445_v32  ;;  %v1463_v37 = vcombine.high %v1429_v34, %v1445_v32 }
 0x673   : > { %2201 = vmatpush3.bf16.msra.mxu1 %v2362_v61 }
 0x674   : > { %v1454_v47 = vrot.slane %v1446_v36, %v3021_v57  ;;  %v1461_v48 = vrot.slane %v1447_v42, %v3021_v57  ;;  %v1470_v49 = vrot.slane %v1462_v44, %v3021_v57  ;;  %v1477_v50 = vrot.slane %v1463_v37, %v3021_v57  ;;  %2202 = vmatprep.subr.bf16.mxu1 %v2659_v0 }
 0x675   : > { %v1648_v42 = vsub.s32 3, %v2982_v19  ;;  %v1653_v44 = vsub.s32 4, %v2982_v19 }
 0x676   : > { %v1482_v52 = vcombine.low %v1454_v47, %v1461_v48  ;;  %v2051_v40 = vcombine.high %v1454_v47, %v1461_v48  ;;  %v1498_v39 = vcombine.low %v1470_v49, %v1477_v50  ;;  %v2052_v41 = vcombine.high %v1470_v49, %v1477_v50 }
 0x677   : > { %2203 = vmatpush3.bf16.msra.mxu1 %v2363_v1  ;;  %v1649_v46 = vrot.slane %v2985_v21, %v1648_v42  ;;  %v1654_v49 = vrot.slane %v2985_v21, %v1653_v44 }
 0x678   : > { %v1489_v55 = vrot.slane %v1482_v52, %v3010_v45  ;;  %v1497_v56 = vrot.slane %v2051_v40, %v3010_v45  ;;  %v1505_v58 = vrot.slane %v1498_v39, %v3010_v45  ;;  %v1513_v59 = vrot.slane %v2052_v41, %v3010_v45  ;;  %2204 = vmatprep.subr.bf16.mxu1 %v2659_v0  ;;  %v2369_v39 = vld [vmem:[#allocation11] sm:$0xff]   ;;  %v2370_v41 = vld [vmem:[#allocation11 + $0x8] sm:$0xff]  }
 0x67a   : > { %v1515_v62 = vcombine.high %v1489_v55, %v1497_v56  ;;  %v1531_v2 = vcombine.high %v1505_v58, %v1513_v59  ;;  %v1514_v3 = vcombine.low %v1489_v55, %v1497_v56  ;;  %v1530_v7 = vcombine.low %v1505_v58, %v1513_v59  ;;  %v2372_v55 = vld [vmem:[#allocation11 + $0x18] sm:$0xff]   ;;  %v2373_v56 = vld [vmem:[#allocation11 + $0x20] sm:$0xff]   ;;  %v2374_v58 = vld [vmem:[#allocation11 + $0x28] sm:$0xff]  }
 0x67b   : > { %2205 = vmatpush3.bf16.msra.mxu1 %v2364_v25  ;;  %v2375_v59 = vld [vmem:[#allocation11 + $0x30] sm:$0xff]  }
 0x67c   : > { %v1529_v8 = vrot.slane %v1515_v62, %v3021_v57  ;;  %v1545_v38 = vrot.slane %v1531_v2, %v3021_v57  ;;  %v1522_v4 = vrot.slane %v1514_v3, %v3021_v57  ;;  %v1538_v9 = vrot.slane %v1530_v7, %v3021_v57  ;;  %2206 = vmatprep.subr.bf16.mxu1 %v2659_v0  ;;  %v2376_v62 = vld [vmem:[#allocation11 + $0x38] sm:$0xff]  }
 0x67d   : > { %v1675_v2 = vsub.s32 6, %v2982_v19 }
 0x67e   : > { %v1548_v43 = vcombine.low %v1529_v8, %v1545_v38  ;;  %v1547_v12 = vcombine.high %v1522_v4, %v1538_v9  ;;  %v1549_v13 = vcombine.high %v1529_v8, %v1545_v38  ;;  %v1546_v14 = vcombine.low %v1522_v4, %v1538_v9 }
 0x67f   : > { %2207 = vmatpush3.bf16.msra.mxu1 %v2365_v26  ;;  %v1676_v3 = vrot.slane %v2985_v21, %v1675_v2  ;;  %v1793_v21 = vsub.s32 5, %v2982_v19 }
 0x680   : > { %1555 = vrot.lane.b32.xlu1 %v1548_v43, %s2670_s30  ;;  %1551 = vrot.lane.b32.xlu0 %v1547_v12, %s2671_s25 }
 0x681   : > { %2208 = vmatprep.subr.bf16.mxu1 %v2659_v0 }
 0x683   : > { %2209 = vmatpush3.bf16.msra.mxu1 %v2366_v27 }
 0x684   : > { %1559 = vrot.lane.b32.xlu0 %v1549_v13, %s2672_s16  ;;  %2210 = vmatprep.subr.bf16.mxu1 %v2659_v0 }
 0x687   : > { %2211 = vmatpush3.bf16.msra.mxu1 %v2367_v28 }
 0x688   : > { %2212 = vmatprep.subr.bf16.mxu1 %v2659_v0 }
 0x68b   : > { %2213 = vmatpush3.bf16.msra.mxu1 %v2368_v29 }
 0x6f2   : > { %v1552_v45 = vpop.permute.xlu0 %1551  ;;  %v1556_v15 = vpop.permute.xlu1 %1555 }
 0x6f3   : > { %v1562_v16 = vsel %vm988_vm1, %v1546_v14, %v1552_v45 }
 0x6f4   : > { %v1564_v5 = vsel %vm1563_vm4, %v1562_v16, %v1556_v15 }
 0x6f6   : > { %v1560_v18 = vpop.permute.xlu0 %1559 }
 0x6f7   : > { %v1566_v57 = vsel %vm1565_vm5, %v1564_v5, %v1560_v18 }
 0x6f8   : > { %v1567_v6 = vpack.c.bf16 %v1566_v57, %v1566_v57  ;;  %v2400_v57 = vld [vmem:[#allocation5] sm:$0xff] }
 0x6fa   : > { %2195 = vmatmul.mubr.msk.bf16.vlgmr.msra.gmra.mrb[12].mxu0 %vm1588_vm6, %v1567_v6  ;;  %v1794_v6 = vrot.slane %v2400_v57, %v1793_v21 }
 0x6fb   : > { %2234 = vmatprep.mubr.msk.bf16.mxu0 %vm2660_vm0, %v2659_v0  ;;  %2219 = vmatpush3.bf16.msra.mxu0 %v2369_v39 }
 0x6fc   : > { %2220 = vmatprep.subr.bf16.mxu0 %v2659_v0 }
 0x6ff   : > { %2221 = vmatpush3.bf16.msra.mxu0 %v2370_v41 }
 0x700   : > { %2222 = vmatprep.subr.bf16.mxu0 %v2659_v0 }
 0x703   : > { %2223 = vmatpush3.bf16.msra.mxu0 %v2371_v54 }
 0x704   : > { %2224 = vmatprep.subr.bf16.mxu0 %v2659_v0 }
 0x707   : > { %2225 = vmatpush3.bf16.msra.mxu0 %v2372_v55 }
 0x708   : > { %2226 = vmatprep.subr.bf16.mxu0 %v2659_v0 }
 0x70b   : > { %2227 = vmatpush3.bf16.msra.mxu0 %v2373_v56 }
 0x70c   : > { %2228 = vmatprep.subr.bf16.mxu0 %v2659_v0 }
 0x70f   : > { %2229 = vmatpush3.bf16.msra.mxu0 %v2374_v58 }
 0x710   : > { %2230 = vmatprep.subr.bf16.mxu0 %v2659_v0 }
 0x713   : > { %2231 = vmatpush3.bf16.msra.mxu0 %v2375_v59 }
 0x714   : > { %2232 = vmatprep.subr.bf16.mxu0 %v2659_v0 }
 0x717   : > { %2233 = vmatpush3.bf16.msra.mxu0 %v2376_v62 }
 0x7cd   : > { %v1626_v20 = vpop.f32.mrb[12].mxu0 }
 0x7ce   : > { %v1627_v51 = vadd.f32 %v1626_v20, %v1575_v17  ;;  %v2196_v22 = vpop.f32.mrb[13].mxu0 }
 0x7cf   : > { %v1629_v23 = vpop.f32.mrb[14].mxu0 }
 0x7d0   : > { %v3194_v53 = vadd.f32 %v2399_v60, %v1627_v51  ;;  %v2197_v63 = vpop.f32.mrb[15].mxu0 }
 0x7d2   : > { %1633 = vadd.xlane.f32.xlu1 %v3194_v53  ;;  %v1635_v24 = vmul.f32 %v3194_v53, %v3194_v53 }
 0x7d4   : > { %1636 = vadd.xlane.f32.xlu0 %v1635_v24 }
 0x85f   : > { %v1634_v30 = vpop.xlane.xlu1 %1633 }
 0x860   : > { %v1638_v31 = vmul.f32 0.03125, %v1634_v30 }
 0x861   : > { %v1637_v32 = vpop.xlane.xlu0 %1636 }
 0x862   : > { %v1640_v33 = vmul.f32 %v1638_v31, %v1638_v31  ;;  %v1639_v34 = vmul.f32 0.03125, %v1637_v32  ;;  %v1642_v37 = vsub.f32 %v3194_v53, %v1638_v31 }
 0x864   : > { %v1641_v35 = vsub.f32 %v1639_v34, %v1640_v33 }
 0x866   : > { %v1643_v36 = vadd.f32 1e-05, %v1641_v35 }
 0x868   : > { %2395 = vrsqrt.f32 %v1643_v36 }
 0x872   : > { %v2396_v47 = vpop.eup %2395 }
 0x873   : > { %v1645_v48 = vmul.f32 %v2396_v47, %v1642_v37 }
 0x875   : > { %v1650_v50 = vmul.f32 %v1649_v46, %v1645_v48 }
 0x877   : > { %v1655_v52 = vadd.f32 %v1654_v49, %v1650_v50 }
 0x879   : > { %v1656_v40 = vpack.c.bf16 %v1655_v52, %v1655_v52 }
 0x87b   : > { %2215 = vmatmul.mubr.bf16.vlgmr.msra.gmra.mrb[24].mxu1 %v1656_v40 }
 0x94e   : > { %v1759_v7 = vpop.f32.mrb[24].mxu1 }
 0x94f   : > { %v1760_v8 = vadd.f32 %v1759_v7, %v1676_v3  ;;  %v2216_v38 = vpop.f32.mrb[25].mxu1 }
 0x950   : > { %v1762_v4 = vpop.f32.mrb[26].mxu1 }
 0x951   : > { %v1765_v9 = vmul.f32 %v1760_v8, %v1760_v8  ;;  %v2217_v43 = vpop.f32.mrb[27].mxu1 }
 0x953   : > { %v1766_v12 = vmul.f32 %v1765_v9, %v1760_v8 }
 0x955   : > { %v1767_v13 = vmul.f32 0.044715, %v1766_v12 }
 0x957   : > { %v1768_v14 = vadd.f32 %v1767_v13, %v1760_v8 }
 0x959   : > { %v1769_v45 = vmul.f32 0.7978846, %v1768_v14 }
 0x95b   : > { %2397 = vtanh.f32 %v1769_v45 }
 0x965   : > { %v2398_v15 = vpop.eup %2397 }
 0x966   : > { %v1771_v0 = vadd.f32 1.0, %v2398_v15 }
 0x968   : > { %v1772_v16 = vmul.f32 0.5, %v1771_v0 }
 0x96a   : > { %v1773_v18 = vmul.f32 %v1772_v16, %v1760_v8 }
 0x96c   : > { %v1774_v5 = vpack.c.bf16 %v1773_v18, %v1773_v18 }
 0x96e   : > { %2235 = vmatmul.mubr.bf16.vlgmr.msra.gmra.mrb[16].mxu0 %v1774_v5 }
 0xa41   : > { %v1877_v10 = vpop.f32.mrb[16].mxu0 }
 0xa42   : > { %v1878_v11 = vadd.f32 %v1877_v10, %v1794_v6  ;;  %v2236_v17 = vpop.f32.mrb[17].mxu0 }
 0xa43   : > { %v1880_v20 = vpop.f32.mrb[18].mxu0 }
 0xa44   : > { %v1883_v51 = vadd.f32 %v1878_v11, %v3194_v53  ;;  %v2237_v22 = vpop.f32.mrb[19].mxu0 }
 0xa46   : > { %1884 = vst [vmem:[%s337_s10] sm:$0xff] %v1883_v51 }
 0xa47   : > { %2584 = shalt.err (!%p2581_p9)
}
 0xa48   : > { %s2585_s7 = scalar_lea.hbm %s3227_s28, 128  ;;  %s2589_s25 = scalar_lea.hbm %s3277_s6, 256 }
 0xa49   : > { %p2586_p6 = scmp.ne.s32.totalorder %s3227_s28, %s2585_s7  ;;  %p2590_p8 = scmp.lt.u32.totalorder %s3227_s28, %s3277_s6 }
 0xa4a   : > { %p2591_p10 = scmp.lt.u32.totalorder %s2589_s25, %s2585_s7  ;;  %p2593_p11 = scmp.lt.u32.totalorder %s2585_s7, %s3227_s28 }
 0xa4b   : > { %p2587_p0 = pnand %p2586_p6, %p3296_p13 }
 0xa4c   : > { %p2592_p12 = por %p2591_p10, %p2590_p8 }
 0xa4d   : > { %p2588_p2 = pneg %p2587_p0 }
 0xa4e   : > { %p2594_p5 = por %p2593_p11, %p2592_p12 }
 0xa50   : > { %p2595_p7 = pnand %p2594_p5, %p2588_p2 }
 0xa52   : > { %2598 = shalt.err (!%p2595_p7)
}
 0xa53   : > { %2260 = dma.vmem_to_hbm [thread:$0]  (%p3296_p13), %s3229_s9, 128, %s3227_s28, %s1886_s27  }
 0xa54 PF: > { %s1911_s10 = sand.u32 1, %s2637_s21   ;;  %p3297_p4 = scmp.ne.s32.totalorder %s3287_s19, 0 }
 0xa55   : > { %p3298_p1 = scmp.ge.s32.totalorder %s2649_s24, 2  ;;  %s1912_s18 = scalar_lea.sflag [#allocation4], %s1911_s10 }
 0xa57   : > { %p2283_p3 = pnand %p3298_p1, %p3297_p4 }
 0xa59   : > { %2632 = dma.done.wait (!%p2283_p3), %s1912_s18, 128  }
 0xa5a   : > { %2634 = vsyncadd (!%p2283_p3), %s1912_s18, 4294967168  ;;  %p22_p9 = scmp.ge.s32.totalorder %s2872_s15, 4   ;;  %s3299_s21 = smov %s2641_s22 }
 0xa5b   : > { %s3300_s22 = smov %s2645_s23  ;;  %s3301_s23 = smov %s2884_s13 }
 0xa5c   : > { %s3302_s24 = smov %s2872_s15  ;;  %24 = sbr.rel (!%p22_p9) target bundleno = 8 (0x8), region = 109 }
 0xa63   :  { %1917 = vsyncpa [#allocation3], 1 }
 0xa64   :  { %1919 = vsyncpa [#allocation3 + $0x1], 1 }
 0xa65   :  { %1920 = vsyncpa [#allocation6], 1 }
 0xa66   :  { %1921 = vsyncpa [#allocation9], 1 }
 0xa67   :  { %1922 = vsyncpa [#allocation12], 1 }
 0xa68   :  { %1923 = vsyncpa [#allocation4], 1 }
 0xa69   :  { %1925 = vsyncpa [#allocation4 + $0x1], 1 }

</bundles_post_ra>
